<compile_context>
chip_gen: v7x
topology: tpu7x:2x2x1
jax: 0.10.0
libtpu: 0.0.40
codegen_flags: <defaults>
</compile_context>

<pallas_src>
import jax
import jax.numpy as jnp
import numpy as np
from jax.experimental import pallas as pl
from jax.experimental.pallas import tpu as pltpu

EPS = 1e-5

# Native MXU dtype on v5e/v6e/v7x.  Epilogue math is always f32.
MXU_DTYPE = jnp.bfloat16


# ----------------------------- fused Pallas kernel ----------------------------

def _aideck_block_kernel(x_ref, w1_ref, w2_ref, wp_ref, aux_ref, o_ref,
                         pad1_ref, pad2_ref):
    # x_ref  : (B_tile, H, W, Cin)  f32   NHWC input block
    # w1_ref : (9, Cin,  Cout)      bf16  conv1 per-tap weights, BN1 scale folded
    # w2_ref : (9, Cout, Cout)      bf16  conv2 per-tap weights, BN2 scale folded
    # wp_ref : (Cout, Cout)         bf16  pointwise weights, BN3 scale folded
    # aux_ref: (5, Cout)            f32   rows: shift1, shift2, dw_scale, dw_shift, shift3
    # o_ref  : (1, Cout, M)         f32   channels-major output, M = B_tile*Hh*Wh (lane dense)
    # pad1_ref/pad2_ref: (B_tile, Hh+2, Wh+2, C) f32 halo scratches
    B, H, W, Cin = x_ref.shape
    _, Cout, M = o_ref.shape
    Hh, Wh = H // 2, W // 2

    def zero_border(pad_ref):
        # Only the 1-element halo ever needs to be zero; the interior is fully
        # rewritten every step.  Zeroing just the border each step is cheap and
        # stays correct under megacore "parallel" grid sharding.
        Bp, Hp, Wp, C = pad_ref.shape
        zrow = jnp.zeros((Bp, 1, Wp, C), pad_ref.dtype)
        pad_ref[:, 0:1, :, :] = zrow
        pad_ref[:, Hp - 1:Hp, :, :] = zrow
        zcol = jnp.zeros((Bp, Hp, 1, C), pad_ref.dtype)
        pad_ref[:, :, 0:1, :] = zcol
        pad_ref[:, :, Wp - 1:Wp, :] = zcol

    zero_border(pad1_ref)
    zero_border(pad2_ref)

    # ---------------- MaxPool2d(2, 2), entirely in registers ----------------
    c0 = x_ref[:, :, pl.ds(0, Wh, 2), :]          # even columns (B, H, Wh, Cin)
    c1 = x_ref[:, :, pl.ds(1, Wh, 2), :]          # odd  columns
    colmax = jnp.maximum(c0, c1)                  # (B, H, Wh, Cin)
    cm = colmax.reshape(B, Hh, 2, Wh, Cin)        # splits outer H dim only (free)
    pooled = jnp.maximum(cm[:, :, 0, :, :], cm[:, :, 1, :, :])   # (B, Hh, Wh, Cin)

    # write interior of the conv1 halo buffer (border already zero)
    pad1_ref[:, 1:Hh + 1, 1:Wh + 1, :] = pooled

    def conv3x3(pad_ref, w_ref, shift):
        # 3x3 / stride 1 / pad 1 conv as 9 accumulated small GEMMs from shifted
        # halo views — no (M, 9C) im2col slab, no 9-way lane concatenate.
        C = pad_ref.shape[-1]
        acc = None
        for ky in range(3):
            for kx in range(3):
                tap = pad_ref[:, ky:ky + Hh, kx:kx + Wh, :]        # (B, Hh, Wh, C)
                tap2d = tap.reshape(M, C).astype(MXU_DTYPE)        # tile-aligned collapse
                contrib = jnp.dot(tap2d, w_ref[ky * 3 + kx],
                                  preferred_element_type=jnp.float32)
                acc = contrib if acc is None else acc + contrib
        return jnp.maximum(acc + shift, 0.0)       # BN shift + ReLU (scale folded in w)

    # ---------------- conv1+bn1+relu  ->  conv2+bn2+relu ---------------------
    y1 = conv3x3(pad1_ref, w1_ref, aux_ref[0:1, :])                # (M, Cout)
    pad2_ref[:, 1:Hh + 1, 1:Wh + 1, :] = y1.reshape(B, Hh, Wh, Cout)
    y2 = conv3x3(pad2_ref, w2_ref, aux_ref[1:2, :])                # (M, Cout)

    # ---- SeperableConv2d: 1x1 depthwise(+bias)+BN+ReLU6 -> 1x1 pointwise ----
    z = jnp.clip(y2 * aux_ref[2:3, :] + aux_ref[3:4, :], 0.0, 6.0)
    y3 = jnp.dot(z.astype(MXU_DTYPE), wp_ref[...],
                 preferred_element_type=jnp.float32)
    y3 = jnp.maximum(y3 + aux_ref[4:5, :], 0.0)                    # bn3 + relu

    # Channels-major, 128+-lane unmasked store.
    o_ref[0, :, :] = jnp.transpose(y3)


# ----------------------------- wrapper -----------------------------------------

def _bn_fold(gamma, beta, mean, var):
    s = gamma / jnp.sqrt(var + EPS)
    return s, beta - mean * s


def aideck_block_forward(x_nchw, p):
    N, Cin, H, W = x_nchw.shape
    Cout = p["conv1_w"].shape[0]
    Hh, Wh = H // 2, W // 2
    Msp = Hh * Wh

    # Batch tile: smallest divisor of N making the GEMM M / output lane dim >= 128.
    B_tile = N
    for bt in range(1, N + 1):
        if N % bt == 0 and bt * Msp >= 128:
            B_tile = bt
            break
    G = N // B_tile
    M = B_tile * Msp

    x_nhwc = jnp.transpose(x_nchw, (0, 2, 3, 1)).astype(jnp.float32)

    # Fold BatchNorm (eval mode) into the GEMM weights / per-channel shifts.
    s1, t1 = _bn_fold(p["bn1_g"], p["bn1_b"], p["bn1_m"], p["bn1_v"])
    s2, t2 = _bn_fold(p["bn2_g"], p["bn2_b"], p["bn2_m"], p["bn2_v"])
    ss, ts = _bn_fold(p["bns_g"], p["bns_b"], p["bns_m"], p["bns_v"])
    s3, t3 = _bn_fold(p["bn3_g"], p["bn3_b"], p["bn3_m"], p["bn3_v"])

    # (O, I, kh, kw) -> (kh, kw, I, O) -> (9, I, O); tap order matches the kernel loop.
    w1 = (jnp.transpose(p["conv1_w"], (2, 3, 1, 0)).reshape(9, Cin, Cout)
          * s1).astype(MXU_DTYPE)
    w2 = (jnp.transpose(p["conv2_w"], (2, 3, 1, 0)).reshape(9, Cout, Cout)
          * s2).astype(MXU_DTYPE)
    wp = (p["pw_w"][:, :, 0, 0].T * s3[None, :]).astype(MXU_DTYPE)

    dw_a = p["dw_w"].reshape(Cout) * ss        # depthwise weight * BN_sep scale
    dw_b = p["dw_b"] * ss + ts                 # depthwise bias folded with BN_sep
    shift3 = p["pw_b"] * s3 + t3               # pointwise bias folded with BN3
    aux = jnp.stack([t1, t2, dw_a, dw_b, shift3], axis=0).astype(jnp.float32)

    out = pl.pallas_call(
        _aideck_block_kernel,
        out_shape=jax.ShapeDtypeStruct((G, Cout, M), jnp.float32),
        grid=(G,),
        in_specs=[
            pl.BlockSpec((B_tile, H, W, Cin), lambda g: (g, 0, 0, 0)),
            pl.BlockSpec((9, Cin, Cout), lambda g: (0, 0, 0)),
            pl.BlockSpec((9, Cout, Cout), lambda g: (0, 0, 0)),
            pl.BlockSpec((Cout, Cout), lambda g: (0, 0)),
            pl.BlockSpec((5, Cout), lambda g: (0, 0)),
        ],
        out_specs=pl.BlockSpec((1, Cout, M), lambda g: (g, 0, 0)),
        scratch_shapes=[
            pltpu.VMEM((B_tile, Hh + 2, Wh + 2, Cin), jnp.float32),   # conv1 halo pad
            pltpu.VMEM((B_tile, Hh + 2, Wh + 2, Cout), jnp.float32),  # conv2 halo pad
        ],
        compiler_params=pltpu.CompilerParams(
            dimension_semantics=("parallel",)),                        # megacore on v7x
    )(x_nhwc, w1, w2, wp, aux)

    # (G, Cout, B_tile*Msp) channels-major -> NCHW (tiny layout-only transpose).
    out = out.reshape(G, Cout, B_tile, Hh, Wh)
    return jnp.transpose(out, (0, 2, 1, 3, 4)).reshape(N, Cout, Hh, Wh)


# ----------------------------- pure-JAX reference ------------------------------

def reference_forward(x, p):
    N, C, H, W = x.shape

    def bn(v, g, b, m, s):
        return (v - m[None, :, None, None]) / jnp.sqrt(s[None, :, None, None] + EPS) \
               * g[None, :, None, None] + b[None, :, None, None]

    def conv(v, w, pad):
        return jax.lax.conv_general_dilated(
            v, w, (1, 1), ((pad, pad), (pad, pad)),
            dimension_numbers=("NCHW", "OIHW", "NCHW"))

    xp = x.reshape(N, C, H // 2, 2, W // 2, 2).max(axis=(3, 5))
    y = jnp.maximum(bn(conv(xp, p["conv1_w"], 1), p["bn1_g"], p["bn1_b"], p["bn1_m"], p["bn1_v"]), 0.0)
    y = jnp.maximum(bn(conv(y, p["conv2_w"], 1), p["bn2_g"], p["bn2_b"], p["bn2_m"], p["bn2_v"]), 0.0)
    dw = y * p["dw_w"].reshape(1, -1, 1, 1) + p["dw_b"].reshape(1, -1, 1, 1)
    dw = jnp.clip(bn(dw, p["bns_g"], p["bns_b"], p["bns_m"], p["bns_v"]), 0.0, 6.0)
    pw = conv(dw, p["pw_w"], 0) + p["pw_b"].reshape(1, -1, 1, 1)
    return jnp.maximum(bn(pw, p["bn3_g"], p["bn3_b"], p["bn3_m"], p["bn3_v"]), 0.0)


# ----------------------------------- main --------------------------------------

if __name__ == "__main__":
    in_size, out_size = 4, 8
    N, H, W = 2, 16, 16

    keys = iter(jax.random.split(jax.random.PRNGKey(0), 32))

    def bn_params(prefix, C):
        return {
            f"{prefix}_g": jax.random.uniform(next(keys), (C,), jnp.float32, 0.5, 1.5),
            f"{prefix}_b": 0.1 * jax.random.normal(next(keys), (C,), jnp.float32),
            f"{prefix}_m": 0.1 * jax.random.normal(next(keys), (C,), jnp.float32),
            f"{prefix}_v": jax.random.uniform(next(keys), (C,), jnp.float32, 0.5, 1.5),
        }

    params = {
        "conv1_w": 0.1 * jax.random.normal(next(keys), (out_size, in_size, 3, 3), jnp.float32),
        "conv2_w": 0.1 * jax.random.normal(next(keys), (out_size, out_size, 3, 3), jnp.float32),
        "dw_w":    0.5 * jax.random.normal(next(keys), (out_size, 1, 1, 1), jnp.float32),
        "dw_b":    0.1 * jax.random.normal(next(keys), (out_size,), jnp.float32),
        "pw_w":    0.2 * jax.random.normal(next(keys), (out_size, out_size, 1, 1), jnp.float32),
        "pw_b":    0.1 * jax.random.normal(next(keys), (out_size,), jnp.float32),
    }
    params.update(bn_params("bn1", out_size))
    params.update(bn_params("bn2", out_size))
    params.update(bn_params("bns", out_size))
    params.update(bn_params("bn3", out_size))

    x = jax.random.normal(next(keys), (N, in_size, H, W), jnp.float32)

    fwd = jax.jit(aideck_block_forward)
    out = jax.block_until_ready(fwd(x, params))
    ref = jax.block_until_ready(reference_forward(x, params))

    assert out.shape == (N, out_size, H // 2, W // 2), out.shape
    np.testing.assert_allclose(np.asarray(out), np.asarray(ref), rtol=3e-2, atol=3e-2)
    print("KERNEL_OK")
</pallas_src>

<mosaic_0001>
module attributes {stable_mosaic.version = 11 : i64} {
  func.func @_aideck_block_kernel(%arg0: i32, %arg1: memref<2x16x16x4xf32, #tpu.memory_space<vmem>>, %arg2: memref<9x4x8xbf16, #tpu.memory_space<vmem>>, %arg3: memref<9x8x8xbf16, #tpu.memory_space<vmem>>, %arg4: memref<8x8xbf16, #tpu.memory_space<vmem>>, %arg5: memref<5x8xf32, #tpu.memory_space<vmem>>, %arg6: memref<1x8x128xf32, #tpu.memory_space<vmem>>, %arg7: memref<2x10x10x4xf32, #tpu.memory_space<vmem>>, %arg8: memref<2x10x10x8xf32, #tpu.memory_space<vmem>>) attributes {dimension_semantics = [#tpu.dimension_semantics<parallel>], iteration_bounds = array<i64: 1>, scalar_prefetch = 0 : i64, scratch_operands = 2 : i64, tpu.core_type = #tpu.core_type<tc>, window_params = [{transform_indices = @transform_0, window_bounds = array<i64: 2, 16, 16, 4>}, {pipeline_mode = #tpu.pipeline_mode<synchronous>, transform_indices = @transform_1, window_bounds = array<i64: 9, 4, 8>}, {pipeline_mode = #tpu.pipeline_mode<synchronous>, transform_indices = @transform_2, window_bounds = array<i64: 9, 8, 8>}, {pipeline_mode = #tpu.pipeline_mode<synchronous>, transform_indices = @transform_3, window_bounds = array<i64: 8, 8>}, {pipeline_mode = #tpu.pipeline_mode<synchronous>, transform_indices = @transform_4, window_bounds = array<i64: 5, 8>}, {transform_indices = @transform_5, window_bounds = array<i64: 1, 8, 128>}]} {
    %cst = arith.constant 0.000000e+00 : f32
    %0 = vector.broadcast %cst : f32 to vector<2x1x10x4xf32>
    %c0 = arith.constant 0 : index
    %c0_0 = arith.constant 0 : index
    %c0_1 = arith.constant 0 : index
    %c0_2 = arith.constant 0 : index
    %1 = vector.load %arg7[%c0, %c0_0, %c0_1, %c0_2] : memref<2x10x10x4xf32, #tpu.memory_space<vmem>>, vector<2x1x10x4xf32>
    tpu.vector_store %arg7[%c0, %c0_0, %c0_1, %c0_2], %0 {strides = array<i32>} : memref<2x10x10x4xf32, #tpu.memory_space<vmem>>, vector<2x1x10x4xf32>,
    %c0_3 = arith.constant 0 : index
    %c9 = arith.constant 9 : index
    %c0_4 = arith.constant 0 : index
    %c0_5 = arith.constant 0 : index
    %2 = vector.load %arg7[%c0_3, %c9, %c0_4, %c0_5] : memref<2x10x10x4xf32, #tpu.memory_space<vmem>>, vector<2x1x10x4xf32>
    tpu.vector_store %arg7[%c0_3, %c9, %c0_4, %c0_5], %0 {strides = array<i32>} : memref<2x10x10x4xf32, #tpu.memory_space<vmem>>, vector<2x1x10x4xf32>,
    %cst_6 = arith.constant 0.000000e+00 : f32
    %3 = vector.broadcast %cst_6 : f32 to vector<2x10x1x4xf32>
    %c0_7 = arith.constant 0 : index
    %c0_8 = arith.constant 0 : index
    %c0_9 = arith.constant 0 : index
    %c0_10 = arith.constant 0 : index
    %4 = vector.load %arg7[%c0_7, %c0_8, %c0_9, %c0_10] : memref<2x10x10x4xf32, #tpu.memory_space<vmem>>, vector<2x10x1x4xf32>
    tpu.vector_store %arg7[%c0_7, %c0_8, %c0_9, %c0_10], %3 {strides = array<i32>} : memref<2x10x10x4xf32, #tpu.memory_space<vmem>>, vector<2x10x1x4xf32>,
    %c0_11 = arith.constant 0 : index
    %c0_12 = arith.constant 0 : index
    %c9_13 = arith.constant 9 : index
    %c0_14 = arith.constant 0 : index
    %5 = vector.load %arg7[%c0_11, %c0_12, %c9_13, %c0_14] : memref<2x10x10x4xf32, #tpu.memory_space<vmem>>, vector<2x10x1x4xf32>
    tpu.vector_store %arg7[%c0_11, %c0_12, %c9_13, %c0_14], %3 {strides = array<i32>} : memref<2x10x10x4xf32, #tpu.memory_space<vmem>>, vector<2x10x1x4xf32>,
    %cst_15 = arith.constant 0.000000e+00 : f32
    %6 = vector.broadcast %cst_15 : f32 to vector<2x1x10x8xf32>
    %c0_16 = arith.constant 0 : index
    %c0_17 = arith.constant 0 : index
    %c0_18 = arith.constant 0 : index
    %c0_19 = arith.constant 0 : index
    %7 = vector.load %arg8[%c0_16, %c0_17, %c0_18, %c0_19] : memref<2x10x10x8xf32, #tpu.memory_space<vmem>>, vector<2x1x10x8xf32>
    tpu.vector_store %arg8[%c0_16, %c0_17, %c0_18, %c0_19], %6 {strides = array<i32>} : memref<2x10x10x8xf32, #tpu.memory_space<vmem>>, vector<2x1x10x8xf32>,
    %c0_20 = arith.constant 0 : index
    %c9_21 = arith.constant 9 : index
    %c0_22 = arith.constant 0 : index
    %c0_23 = arith.constant 0 : index
    %8 = vector.load %arg8[%c0_20, %c9_21, %c0_22, %c0_23] : memref<2x10x10x8xf32, #tpu.memory_space<vmem>>, vector<2x1x10x8xf32>
    tpu.vector_store %arg8[%c0_20, %c9_21, %c0_22, %c0_23], %6 {strides = array<i32>} : memref<2x10x10x8xf32, #tpu.memory_space<vmem>>, vector<2x1x10x8xf32>,
    %cst_24 = arith.constant 0.000000e+00 : f32
    %9 = vector.broadcast %cst_24 : f32 to vector<2x10x1x8xf32>
    %c0_25 = arith.constant 0 : index
    %c0_26 = arith.constant 0 : index
    %c0_27 = arith.constant 0 : index
    %c0_28 = arith.constant 0 : index
    %10 = vector.load %arg8[%c0_25, %c0_26, %c0_27, %c0_28] : memref<2x10x10x8xf32, #tpu.memory_space<vmem>>, vector<2x10x1x8xf32>
    tpu.vector_store %arg8[%c0_25, %c0_26, %c0_27, %c0_28], %9 {strides = array<i32>} : memref<2x10x10x8xf32, #tpu.memory_space<vmem>>, vector<2x10x1x8xf32>,
    %c0_29 = arith.constant 0 : index
    %c0_30 = arith.constant 0 : index
    %c9_31 = arith.constant 9 : index
    %c0_32 = arith.constant 0 : index
    %11 = vector.load %arg8[%c0_29, %c0_30, %c9_31, %c0_32] : memref<2x10x10x8xf32, #tpu.memory_space<vmem>>, vector<2x10x1x8xf32>
    tpu.vector_store %arg8[%c0_29, %c0_30, %c9_31, %c0_32], %9 {strides = array<i32>} : memref<2x10x10x8xf32, #tpu.memory_space<vmem>>, vector<2x10x1x8xf32>,
    %c0_33 = arith.constant 0 : index
    %c0_34 = arith.constant 0 : index
    %c0_35 = arith.constant 0 : index
    %c0_36 = arith.constant 0 : index
    %12 = tpu.strided_load %arg1[%c0_33, %c0_34, %c0_35, %c0_36] {strides = array<i32: 1, 1, 2, 1>} : memref<2x16x16x4xf32, #tpu.memory_space<vmem>>, vector<2x16x8x4xf32>
    %c0_37 = arith.constant 0 : index
    %c0_38 = arith.constant 0 : index
    %c1 = arith.constant 1 : index
    %c0_39 = arith.constant 0 : index
    %13 = tpu.strided_load %arg1[%c0_37, %c0_38, %c1, %c0_39] {strides = array<i32: 1, 1, 2, 1>} : memref<2x16x16x4xf32, #tpu.memory_space<vmem>>, vector<2x16x8x4xf32>
    %14 = arith.maximumf %12, %13 : vector<2x16x8x4xf32>
    %15 = vector.shape_cast %14 : vector<2x16x8x4xf32> to vector<2x8x2x8x4xf32>
    %16 = vector.extract_strided_slice %15 {offsets = [0, 0, 0, 0, 0], sizes = [2, 8, 1, 8, 4], strides = [1, 1, 1, 1, 1]} : vector<2x8x2x8x4xf32> to vector<2x8x1x8x4xf32>
    %17 = vector.shape_cast %16 : vector<2x8x1x8x4xf32> to vector<2x8x8x4xf32>
    %18 = vector.extract_strided_slice %15 {offsets = [0, 0, 1, 0, 0], sizes = [2, 8, 1, 8, 4], strides = [1, 1, 1, 1, 1]} : vector<2x8x2x8x4xf32> to vector<2x8x1x8x4xf32>
    %19 = vector.shape_cast %18 : vector<2x8x1x8x4xf32> to vector<2x8x8x4xf32>
    %20 = arith.maximumf %17, %19 : vector<2x8x8x4xf32>
    %c0_40 = arith.constant 0 : index
    %c1_41 = arith.constant 1 : index
    %c1_42 = arith.constant 1 : index
    %c0_43 = arith.constant 0 : index
    %21 = vector.load %arg7[%c0_40, %c1_41, %c1_42, %c0_43] : memref<2x10x10x4xf32, #tpu.memory_space<vmem>>, vector<2x8x8x4xf32>
    tpu.vector_store %arg7[%c0_40, %c1_41, %c1_42, %c0_43], %20 {strides = array<i32>} : memref<2x10x10x4xf32, #tpu.memory_space<vmem>>, vector<2x8x8x4xf32>,
    %c0_44 = arith.constant 0 : index
    %c0_45 = arith.constant 0 : index
    %22 = vector.load %arg5[%c0_44, %c0_45] : memref<5x8xf32, #tpu.memory_space<vmem>>, vector<1x8xf32>
    %c0_46 = arith.constant 0 : index
    %c0_47 = arith.constant 0 : index
    %c0_48 = arith.constant 0 : index
    %c0_49 = arith.constant 0 : index
    %23 = vector.load %arg7[%c0_46, %c0_47, %c0_48, %c0_49] : memref<2x10x10x4xf32, #tpu.memory_space<vmem>>, vector<2x8x8x4xf32>
    %24 = vector.shape_cast %23 : vector<2x8x8x4xf32> to vector<128x4xf32>
    %25 = arith.truncf %24 : vector<128x4xf32> to vector<128x4xbf16>
    %c0_50 = arith.constant 0 : index
    %c0_51 = arith.constant 0 : index
    %c0_52 = arith.constant 0 : index
    %26 = vector.load %arg2[%c0_50, %c0_51, %c0_52] : memref<9x4x8xbf16, #tpu.memory_space<vmem>>, vector<1x4x8xbf16>
    %27 = vector.shape_cast %26 : vector<1x4x8xbf16> to vector<4x8xbf16>
    %cst_53 = arith.constant dense<0.000000e+00> : vector<128x8xf32>
    %28 = tpu.matmul %25, %27, %cst_53 {dimension_numbers = #tpu.dot_dimension_numbers<[1], [0], [0], [1], [0, 0, 1, 1], [], []>} : vector<128x4xbf16>, vector<4x8xbf16>, vector<128x8xf32> -> vector<128x8xf32>
    %c0_54 = arith.constant 0 : index
    %c0_55 = arith.constant 0 : index
    %c1_56 = arith.constant 1 : index
    %c0_57 = arith.constant 0 : index
    %29 = vector.load %arg7[%c0_54, %c0_55, %c1_56, %c0_57] : memref<2x10x10x4xf32, #tpu.memory_space<vmem>>, vector<2x8x8x4xf32>
    %30 = vector.shape_cast %29 : vector<2x8x8x4xf32> to vector<128x4xf32>
    %31 = arith.truncf %30 : vector<128x4xf32> to vector<128x4xbf16>
    %c1_58 = arith.constant 1 : index
    %c0_59 = arith.constant 0 : index
    %c0_60 = arith.constant 0 : index
    %32 = vector.load %arg2[%c1_58, %c0_59, %c0_60] : memref<9x4x8xbf16, #tpu.memory_space<vmem>>, vector<1x4x8xbf16>
    %33 = vector.shape_cast %32 : vector<1x4x8xbf16> to vector<4x8xbf16>
    %cst_61 = arith.constant dense<0.000000e+00> : vector<128x8xf32>
    %34 = tpu.matmul %31, %33, %cst_61 {dimension_numbers = #tpu.dot_dimension_numbers<[1], [0], [0], [1], [0, 0, 1, 1], [], []>} : vector<128x4xbf16>, vector<4x8xbf16>, vector<128x8xf32> -> vector<128x8xf32>
    %35 = arith.addf %28, %34 : vector<128x8xf32>
    %c0_62 = arith.constant 0 : index
    %c0_63 = arith.constant 0 : index
    %c2 = arith.constant 2 : index
    %c0_64 = arith.constant 0 : index
    %36 = vector.load %arg7[%c0_62, %c0_63, %c2, %c0_64] : memref<2x10x10x4xf32, #tpu.memory_space<vmem>>, vector<2x8x8x4xf32>
    %37 = vector.shape_cast %36 : vector<2x8x8x4xf32> to vector<128x4xf32>
    %38 = arith.truncf %37 : vector<128x4xf32> to vector<128x4xbf16>
    %c2_65 = arith.constant 2 : index
    %c0_66 = arith.constant 0 : index
    %c0_67 = arith.constant 0 : index
    %39 = vector.load %arg2[%c2_65, %c0_66, %c0_67] : memref<9x4x8xbf16, #tpu.memory_space<vmem>>, vector<1x4x8xbf16>
    %40 = vector.shape_cast %39 : vector<1x4x8xbf16> to vector<4x8xbf16>
    %cst_68 = arith.constant dense<0.000000e+00> : vector<128x8xf32>
    %41 = tpu.matmul %38, %40, %cst_68 {dimension_numbers = #tpu.dot_dimension_numbers<[1], [0], [0], [1], [0, 0, 1, 1], [], []>} : vector<128x4xbf16>, vector<4x8xbf16>, vector<128x8xf32> -> vector<128x8xf32>
    %42 = arith.addf %35, %41 : vector<128x8xf32>
    %c0_69 = arith.constant 0 : index
    %c1_70 = arith.constant 1 : index
    %c0_71 = arith.constant 0 : index
    %c0_72 = arith.constant 0 : index
    %43 = vector.load %arg7[%c0_69, %c1_70, %c0_71, %c0_72] : memref<2x10x10x4xf32, #tpu.memory_space<vmem>>, vector<2x8x8x4xf32>
    %44 = vector.shape_cast %43 : vector<2x8x8x4xf32> to vector<128x4xf32>
    %45 = arith.truncf %44 : vector<128x4xf32> to vector<128x4xbf16>
    %c3 = arith.constant 3 : index
    %c0_73 = arith.constant 0 : index
    %c0_74 = arith.constant 0 : index
    %46 = vector.load %arg2[%c3, %c0_73, %c0_74] : memref<9x4x8xbf16, #tpu.memory_space<vmem>>, vector<1x4x8xbf16>
    %47 = vector.shape_cast %46 : vector<1x4x8xbf16> to vector<4x8xbf16>
    %cst_75 = arith.constant dense<0.000000e+00> : vector<128x8xf32>
    %48 = tpu.matmul %45, %47, %cst_75 {dimension_numbers = #tpu.dot_dimension_numbers<[1], [0], [0], [1], [0, 0, 1, 1], [], []>} : vector<128x4xbf16>, vector<4x8xbf16>, vector<128x8xf32> -> vector<128x8xf32>
    %49 = arith.addf %42, %48 : vector<128x8xf32>
    %c0_76 = arith.constant 0 : index
    %c1_77 = arith.constant 1 : index
    %c1_78 = arith.constant 1 : index
    %c0_79 = arith.constant 0 : index
    %50 = vector.load %arg7[%c0_76, %c1_77, %c1_78, %c0_79] : memref<2x10x10x4xf32, #tpu.memory_space<vmem>>, vector<2x8x8x4xf32>
    %51 = vector.shape_cast %50 : vector<2x8x8x4xf32> to vector<128x4xf32>
    %52 = arith.truncf %51 : vector<128x4xf32> to vector<128x4xbf16>
    %c4 = arith.constant 4 : index
    %c0_80 = arith.constant 0 : index
    %c0_81 = arith.constant 0 : index
    %53 = vector.load %arg2[%c4, %c0_80, %c0_81] : memref<9x4x8xbf16, #tpu.memory_space<vmem>>, vector<1x4x8xbf16>
    %54 = vector.shape_cast %53 : vector<1x4x8xbf16> to vector<4x8xbf16>
    %cst_82 = arith.constant dense<0.000000e+00> : vector<128x8xf32>
    %55 = tpu.matmul %52, %54, %cst_82 {dimension_numbers = #tpu.dot_dimension_numbers<[1], [0], [0], [1], [0, 0, 1, 1], [], []>} : vector<128x4xbf16>, vector<4x8xbf16>, vector<128x8xf32> -> vector<128x8xf32>
    %56 = arith.addf %49, %55 : vector<128x8xf32>
    %c0_83 = arith.constant 0 : index
    %c1_84 = arith.constant 1 : index
    %c2_85 = arith.constant 2 : index
    %c0_86 = arith.constant 0 : index
    %57 = vector.load %arg7[%c0_83, %c1_84, %c2_85, %c0_86] : memref<2x10x10x4xf32, #tpu.memory_space<vmem>>, vector<2x8x8x4xf32>
    %58 = vector.shape_cast %57 : vector<2x8x8x4xf32> to vector<128x4xf32>
    %59 = arith.truncf %58 : vector<128x4xf32> to vector<128x4xbf16>
    %c5 = arith.constant 5 : index
    %c0_87 = arith.constant 0 : index
    %c0_88 = arith.constant 0 : index
    %60 = vector.load %arg2[%c5, %c0_87, %c0_88] : memref<9x4x8xbf16, #tpu.memory_space<vmem>>, vector<1x4x8xbf16>
    %61 = vector.shape_cast %60 : vector<1x4x8xbf16> to vector<4x8xbf16>
    %cst_89 = arith.constant dense<0.000000e+00> : vector<128x8xf32>
    %62 = tpu.matmul %59, %61, %cst_89 {dimension_numbers = #tpu.dot_dimension_numbers<[1], [0], [0], [1], [0, 0, 1, 1], [], []>} : vector<128x4xbf16>, vector<4x8xbf16>, vector<128x8xf32> -> vector<128x8xf32>
    %63 = arith.addf %56, %62 : vector<128x8xf32>
    %c0_90 = arith.constant 0 : index
    %c2_91 = arith.constant 2 : index
    %c0_92 = arith.constant 0 : index
    %c0_93 = arith.constant 0 : index
    %64 = vector.load %arg7[%c0_90, %c2_91, %c0_92, %c0_93] : memref<2x10x10x4xf32, #tpu.memory_space<vmem>>, vector<2x8x8x4xf32>
    %65 = vector.shape_cast %64 : vector<2x8x8x4xf32> to vector<128x4xf32>
    %66 = arith.truncf %65 : vector<128x4xf32> to vector<128x4xbf16>
    %c6 = arith.constant 6 : index
    %c0_94 = arith.constant 0 : index
    %c0_95 = arith.constant 0 : index
    %67 = vector.load %arg2[%c6, %c0_94, %c0_95] : memref<9x4x8xbf16, #tpu.memory_space<vmem>>, vector<1x4x8xbf16>
    %68 = vector.shape_cast %67 : vector<1x4x8xbf16> to vector<4x8xbf16>
    %cst_96 = arith.constant dense<0.000000e+00> : vector<128x8xf32>
    %69 = tpu.matmul %66, %68, %cst_96 {dimension_numbers = #tpu.dot_dimension_numbers<[1], [0], [0], [1], [0, 0, 1, 1], [], []>} : vector<128x4xbf16>, vector<4x8xbf16>, vector<128x8xf32> -> vector<128x8xf32>
    %70 = arith.addf %63, %69 : vector<128x8xf32>
    %c0_97 = arith.constant 0 : index
    %c2_98 = arith.constant 2 : index
    %c1_99 = arith.constant 1 : index
    %c0_100 = arith.constant 0 : index
    %71 = vector.load %arg7[%c0_97, %c2_98, %c1_99, %c0_100] : memref<2x10x10x4xf32, #tpu.memory_space<vmem>>, vector<2x8x8x4xf32>
    %72 = vector.shape_cast %71 : vector<2x8x8x4xf32> to vector<128x4xf32>
    %73 = arith.truncf %72 : vector<128x4xf32> to vector<128x4xbf16>
    %c7 = arith.constant 7 : index
    %c0_101 = arith.constant 0 : index
    %c0_102 = arith.constant 0 : index
    %74 = vector.load %arg2[%c7, %c0_101, %c0_102] : memref<9x4x8xbf16, #tpu.memory_space<vmem>>, vector<1x4x8xbf16>
    %75 = vector.shape_cast %74 : vector<1x4x8xbf16> to vector<4x8xbf16>
    %cst_103 = arith.constant dense<0.000000e+00> : vector<128x8xf32>
    %76 = tpu.matmul %73, %75, %cst_103 {dimension_numbers = #tpu.dot_dimension_numbers<[1], [0], [0], [1], [0, 0, 1, 1], [], []>} : vector<128x4xbf16>, vector<4x8xbf16>, vector<128x8xf32> -> vector<128x8xf32>
    %77 = arith.addf %70, %76 : vector<128x8xf32>
    %c0_104 = arith.constant 0 : index
    %c2_105 = arith.constant 2 : index
    %c2_106 = arith.constant 2 : index
    %c0_107 = arith.constant 0 : index
    %78 = vector.load %arg7[%c0_104, %c2_105, %c2_106, %c0_107] : memref<2x10x10x4xf32, #tpu.memory_space<vmem>>, vector<2x8x8x4xf32>
    %79 = vector.shape_cast %78 : vector<2x8x8x4xf32> to vector<128x4xf32>
    %80 = arith.truncf %79 : vector<128x4xf32> to vector<128x4xbf16>
    %c8 = arith.constant 8 : index
    %c0_108 = arith.constant 0 : index
    %c0_109 = arith.constant 0 : index
    %81 = vector.load %arg2[%c8, %c0_108, %c0_109] : memref<9x4x8xbf16, #tpu.memory_space<vmem>>, vector<1x4x8xbf16>
    %82 = vector.shape_cast %81 : vector<1x4x8xbf16> to vector<4x8xbf16>
    %cst_110 = arith.constant dense<0.000000e+00> : vector<128x8xf32>
    %83 = tpu.matmul %80, %82, %cst_110 {dimension_numbers = #tpu.dot_dimension_numbers<[1], [0], [0], [1], [0, 0, 1, 1], [], []>} : vector<128x4xbf16>, vector<4x8xbf16>, vector<128x8xf32> -> vector<128x8xf32>
    %84 = arith.addf %77, %83 : vector<128x8xf32>
    %85 = vector.broadcast %22 : vector<1x8xf32> to vector<128x8xf32>
    %86 = arith.addf %84, %85 : vector<128x8xf32>
    %cst_111 = arith.constant 0.000000e+00 : f32
    %87 = vector.broadcast %cst_111 : f32 to vector<128x8xf32>
    %88 = arith.maximumf %86, %87 : vector<128x8xf32>
    %89 = vector.shape_cast %88 : vector<128x8xf32> to vector<2x8x8x8xf32>
    %c0_112 = arith.constant 0 : index
    %c1_113 = arith.constant 1 : index
    %c1_114 = arith.constant 1 : index
    %c0_115 = arith.constant 0 : index
    %90 = vector.load %arg8[%c0_112, %c1_113, %c1_114, %c0_115] : memref<2x10x10x8xf32, #tpu.memory_space<vmem>>, vector<2x8x8x8xf32>
    tpu.vector_store %arg8[%c0_112, %c1_113, %c1_114, %c0_115], %89 {strides = array<i32>} : memref<2x10x10x8xf32, #tpu.memory_space<vmem>>, vector<2x8x8x8xf32>,
    %c1_116 = arith.constant 1 : index
    %c0_117 = arith.constant 0 : index
    %91 = vector.load %arg5[%c1_116, %c0_117] : memref<5x8xf32, #tpu.memory_space<vmem>>, vector<1x8xf32>
    %c0_118 = arith.constant 0 : index
    %c0_119 = arith.constant 0 : index
    %c0_120 = arith.constant 0 : index
    %c0_121 = arith.constant 0 : index
    %92 = vector.load %arg8[%c0_118, %c0_119, %c0_120, %c0_121] : memref<2x10x10x8xf32, #tpu.memory_space<vmem>>, vector<2x8x8x8xf32>
    %93 = vector.shape_cast %92 : vector<2x8x8x8xf32> to vector<128x8xf32>
    %94 = arith.truncf %93 : vector<128x8xf32> to vector<128x8xbf16>
    %c0_122 = arith.constant 0 : index
    %c0_123 = arith.constant 0 : index
    %c0_124 = arith.constant 0 : index
    %95 = vector.load %arg3[%c0_122, %c0_123, %c0_124] : memref<9x8x8xbf16, #tpu.memory_space<vmem>>, vector<1x8x8xbf16>
    %96 = vector.shape_cast %95 : vector<1x8x8xbf16> to vector<8x8xbf16>
    %cst_125 = arith.constant dense<0.000000e+00> : vector<128x8xf32>
    %97 = tpu.matmul %94, %96, %cst_125 {dimension_numbers = #tpu.dot_dimension_numbers<[1], [0], [0], [1], [0, 0, 1, 1], [], []>} : vector<128x8xbf16>, vector<8x8xbf16>, vector<128x8xf32> -> vector<128x8xf32>
    %c0_126 = arith.constant 0 : index
    %c0_127 = arith.constant 0 : index
    %c1_128 = arith.constant 1 : index
    %c0_129 = arith.constant 0 : index
    %98 = vector.load %arg8[%c0_126, %c0_127, %c1_128, %c0_129] : memref<2x10x10x8xf32, #tpu.memory_space<vmem>>, vector<2x8x8x8xf32>
    %99 = vector.shape_cast %98 : vector<2x8x8x8xf32> to vector<128x8xf32>
    %100 = arith.truncf %99 : vector<128x8xf32> to vector<128x8xbf16>
    %c1_130 = arith.constant 1 : index
    %c0_131 = arith.constant 0 : index
    %c0_132 = arith.constant 0 : index
    %101 = vector.load %arg3[%c1_130, %c0_131, %c0_132] : memref<9x8x8xbf16, #tpu.memory_space<vmem>>, vector<1x8x8xbf16>
    %102 = vector.shape_cast %101 : vector<1x8x8xbf16> to vector<8x8xbf16>
    %cst_133 = arith.constant dense<0.000000e+00> : vector<128x8xf32>
    %103 = tpu.matmul %100, %102, %cst_133 {dimension_numbers = #tpu.dot_dimension_numbers<[1], [0], [0], [1], [0, 0, 1, 1], [], []>} : vector<128x8xbf16>, vector<8x8xbf16>, vector<128x8xf32> -> vector<128x8xf32>
    %104 = arith.addf %97, %103 : vector<128x8xf32>
    %c0_134 = arith.constant 0 : index
    %c0_135 = arith.constant 0 : index
    %c2_136 = arith.constant 2 : index
    %c0_137 = arith.constant 0 : index
    %105 = vector.load %arg8[%c0_134, %c0_135, %c2_136, %c0_137] : memref<2x10x10x8xf32, #tpu.memory_space<vmem>>, vector<2x8x8x8xf32>
    %106 = vector.shape_cast %105 : vector<2x8x8x8xf32> to vector<128x8xf32>
    %107 = arith.truncf %106 : vector<128x8xf32> to vector<128x8xbf16>
    %c2_138 = arith.constant 2 : index
    %c0_139 = arith.constant 0 : index
    %c0_140 = arith.constant 0 : index
    %108 = vector.load %arg3[%c2_138, %c0_139, %c0_140] : memref<9x8x8xbf16, #tpu.memory_space<vmem>>, vector<1x8x8xbf16>
    %109 = vector.shape_cast %108 : vector<1x8x8xbf16> to vector<8x8xbf16>
    %cst_141 = arith.constant dense<0.000000e+00> : vector<128x8xf32>
    %110 = tpu.matmul %107, %109, %cst_141 {dimension_numbers = #tpu.dot_dimension_numbers<[1], [0], [0], [1], [0, 0, 1, 1], [], []>} : vector<128x8xbf16>, vector<8x8xbf16>, vector<128x8xf32> -> vector<128x8xf32>
    %111 = arith.addf %104, %110 : vector<128x8xf32>
    %c0_142 = arith.constant 0 : index
    %c1_143 = arith.constant 1 : index
    %c0_144 = arith.constant 0 : index
    %c0_145 = arith.constant 0 : index
    %112 = vector.load %arg8[%c0_142, %c1_143, %c0_144, %c0_145] : memref<2x10x10x8xf32, #tpu.memory_space<vmem>>, vector<2x8x8x8xf32>
    %113 = vector.shape_cast %112 : vector<2x8x8x8xf32> to vector<128x8xf32>
    %114 = arith.truncf %113 : vector<128x8xf32> to vector<128x8xbf16>
    %c3_146 = arith.constant 3 : index
    %c0_147 = arith.constant 0 : index
    %c0_148 = arith.constant 0 : index
    %115 = vector.load %arg3[%c3_146, %c0_147, %c0_148] : memref<9x8x8xbf16, #tpu.memory_space<vmem>>, vector<1x8x8xbf16>
    %116 = vector.shape_cast %115 : vector<1x8x8xbf16> to vector<8x8xbf16>
    %cst_149 = arith.constant dense<0.000000e+00> : vector<128x8xf32>
    %117 = tpu.matmul %114, %116, %cst_149 {dimension_numbers = #tpu.dot_dimension_numbers<[1], [0], [0], [1], [0, 0, 1, 1], [], []>} : vector<128x8xbf16>, vector<8x8xbf16>, vector<128x8xf32> -> vector<128x8xf32>
    %118 = arith.addf %111, %117 : vector<128x8xf32>
    %c0_150 = arith.constant 0 : index
    %c1_151 = arith.constant 1 : index
    %c1_152 = arith.constant 1 : index
    %c0_153 = arith.constant 0 : index
    %119 = vector.load %arg8[%c0_150, %c1_151, %c1_152, %c0_153] : memref<2x10x10x8xf32, #tpu.memory_space<vmem>>, vector<2x8x8x8xf32>
    %120 = vector.shape_cast %119 : vector<2x8x8x8xf32> to vector<128x8xf32>
    %121 = arith.truncf %120 : vector<128x8xf32> to vector<128x8xbf16>
    %c4_154 = arith.constant 4 : index
    %c0_155 = arith.constant 0 : index
    %c0_156 = arith.constant 0 : index
    %122 = vector.load %arg3[%c4_154, %c0_155, %c0_156] : memref<9x8x8xbf16, #tpu.memory_space<vmem>>, vector<1x8x8xbf16>
    %123 = vector.shape_cast %122 : vector<1x8x8xbf16> to vector<8x8xbf16>
    %cst_157 = arith.constant dense<0.000000e+00> : vector<128x8xf32>
    %124 = tpu.matmul %121, %123, %cst_157 {dimension_numbers = #tpu.dot_dimension_numbers<[1], [0], [0], [1], [0, 0, 1, 1], [], []>} : vector<128x8xbf16>, vector<8x8xbf16>, vector<128x8xf32> -> vector<128x8xf32>
    %125 = arith.addf %118, %124 : vector<128x8xf32>
    %c0_158 = arith.constant 0 : index
    %c1_159 = arith.constant 1 : index
    %c2_160 = arith.constant 2 : index
    %c0_161 = arith.constant 0 : index
    %126 = vector.load %arg8[%c0_158, %c1_159, %c2_160, %c0_161] : memref<2x10x10x8xf32, #tpu.memory_space<vmem>>, vector<2x8x8x8xf32>
    %127 = vector.shape_cast %126 : vector<2x8x8x8xf32> to vector<128x8xf32>
    %128 = arith.truncf %127 : vector<128x8xf32> to vector<128x8xbf16>
    %c5_162 = arith.constant 5 : index
    %c0_163 = arith.constant 0 : index
    %c0_164 = arith.constant 0 : index
    %129 = vector.load %arg3[%c5_162, %c0_163, %c0_164] : memref<9x8x8xbf16, #tpu.memory_space<vmem>>, vector<1x8x8xbf16>
    %130 = vector.shape_cast %129 : vector<1x8x8xbf16> to vector<8x8xbf16>
    %cst_165 = arith.constant dense<0.000000e+00> : vector<128x8xf32>
    %131 = tpu.matmul %128, %130, %cst_165 {dimension_numbers = #tpu.dot_dimension_numbers<[1], [0], [0], [1], [0, 0, 1, 1], [], []>} : vector<128x8xbf16>, vector<8x8xbf16>, vector<128x8xf32> -> vector<128x8xf32>
    %132 = arith.addf %125, %131 : vector<128x8xf32>
    %c0_166 = arith.constant 0 : index
    %c2_167 = arith.constant 2 : index
    %c0_168 = arith.constant 0 : index
    %c0_169 = arith.constant 0 : index
    %133 = vector.load %arg8[%c0_166, %c2_167, %c0_168, %c0_169] : memref<2x10x10x8xf32, #tpu.memory_space<vmem>>, vector<2x8x8x8xf32>
    %134 = vector.shape_cast %133 : vector<2x8x8x8xf32> to vector<128x8xf32>
    %135 = arith.truncf %134 : vector<128x8xf32> to vector<128x8xbf16>
    %c6_170 = arith.constant 6 : index
    %c0_171 = arith.constant 0 : index
    %c0_172 = arith.constant 0 : index
    %136 = vector.load %arg3[%c6_170, %c0_171, %c0_172] : memref<9x8x8xbf16, #tpu.memory_space<vmem>>, vector<1x8x8xbf16>
    %137 = vector.shape_cast %136 : vector<1x8x8xbf16> to vector<8x8xbf16>
    %cst_173 = arith.constant dense<0.000000e+00> : vector<128x8xf32>
    %138 = tpu.matmul %135, %137, %cst_173 {dimension_numbers = #tpu.dot_dimension_numbers<[1], [0], [0], [1], [0, 0, 1, 1], [], []>} : vector<128x8xbf16>, vector<8x8xbf16>, vector<128x8xf32> -> vector<128x8xf32>
    %139 = arith.addf %132, %138 : vector<128x8xf32>
    %c0_174 = arith.constant 0 : index
    %c2_175 = arith.constant 2 : index
    %c1_176 = arith.constant 1 : index
    %c0_177 = arith.constant 0 : index
    %140 = vector.load %arg8[%c0_174, %c2_175, %c1_176, %c0_177] : memref<2x10x10x8xf32, #tpu.memory_space<vmem>>, vector<2x8x8x8xf32>
    %141 = vector.shape_cast %140 : vector<2x8x8x8xf32> to vector<128x8xf32>
    %142 = arith.truncf %141 : vector<128x8xf32> to vector<128x8xbf16>
    %c7_178 = arith.constant 7 : index
    %c0_179 = arith.constant 0 : index
    %c0_180 = arith.constant 0 : index
    %143 = vector.load %arg3[%c7_178, %c0_179, %c0_180] : memref<9x8x8xbf16, #tpu.memory_space<vmem>>, vector<1x8x8xbf16>
    %144 = vector.shape_cast %143 : vector<1x8x8xbf16> to vector<8x8xbf16>
    %cst_181 = arith.constant dense<0.000000e+00> : vector<128x8xf32>
    %145 = tpu.matmul %142, %144, %cst_181 {dimension_numbers = #tpu.dot_dimension_numbers<[1], [0], [0], [1], [0, 0, 1, 1], [], []>} : vector<128x8xbf16>, vector<8x8xbf16>, vector<128x8xf32> -> vector<128x8xf32>
    %146 = arith.addf %139, %145 : vector<128x8xf32>
    %c0_182 = arith.constant 0 : index
    %c2_183 = arith.constant 2 : index
    %c2_184 = arith.constant 2 : index
    %c0_185 = arith.constant 0 : index
    %147 = vector.load %arg8[%c0_182, %c2_183, %c2_184, %c0_185] : memref<2x10x10x8xf32, #tpu.memory_space<vmem>>, vector<2x8x8x8xf32>
    %148 = vector.shape_cast %147 : vector<2x8x8x8xf32> to vector<128x8xf32>
    %149 = arith.truncf %148 : vector<128x8xf32> to vector<128x8xbf16>
    %c8_186 = arith.constant 8 : index
    %c0_187 = arith.constant 0 : index
    %c0_188 = arith.constant 0 : index
    %150 = vector.load %arg3[%c8_186, %c0_187, %c0_188] : memref<9x8x8xbf16, #tpu.memory_space<vmem>>, vector<1x8x8xbf16>
    %151 = vector.shape_cast %150 : vector<1x8x8xbf16> to vector<8x8xbf16>
    %cst_189 = arith.constant dense<0.000000e+00> : vector<128x8xf32>
    %152 = tpu.matmul %149, %151, %cst_189 {dimension_numbers = #tpu.dot_dimension_numbers<[1], [0], [0], [1], [0, 0, 1, 1], [], []>} : vector<128x8xbf16>, vector<8x8xbf16>, vector<128x8xf32> -> vector<128x8xf32>
    %153 = arith.addf %146, %152 : vector<128x8xf32>
    %154 = vector.broadcast %91 : vector<1x8xf32> to vector<128x8xf32>
    %155 = arith.addf %153, %154 : vector<128x8xf32>
    %cst_190 = arith.constant 0.000000e+00 : f32
    %156 = vector.broadcast %cst_190 : f32 to vector<128x8xf32>
    %157 = arith.maximumf %155, %156 : vector<128x8xf32>
    %c2_191 = arith.constant 2 : index
    %c0_192 = arith.constant 0 : index
    %158 = vector.load %arg5[%c2_191, %c0_192] : memref<5x8xf32, #tpu.memory_space<vmem>>, vector<1x8xf32>
    %159 = vector.broadcast %158 : vector<1x8xf32> to vector<128x8xf32>
    %160 = arith.mulf %157, %159 : vector<128x8xf32>
    %c3_193 = arith.constant 3 : index
    %c0_194 = arith.constant 0 : index
    %161 = vector.load %arg5[%c3_193, %c0_194] : memref<5x8xf32, #tpu.memory_space<vmem>>, vector<1x8xf32>
    %162 = vector.broadcast %161 : vector<1x8xf32> to vector<128x8xf32>
    %163 = arith.addf %160, %162 : vector<128x8xf32>
    %cst_195 = arith.constant 0.000000e+00 : f32
    %cst_196 = arith.constant 6.000000e+00 : f32
    %164 = vector.broadcast %cst_195 : f32 to vector<128x8xf32>
    %165 = arith.maximumf %164, %163 : vector<128x8xf32>
    %166 = vector.broadcast %cst_196 : f32 to vector<128x8xf32>
    %167 = arith.minimumf %166, %165 : vector<128x8xf32>
    %168 = arith.truncf %167 : vector<128x8xf32> to vector<128x8xbf16>
    %c0_197 = arith.constant 0 : index
    %c0_198 = arith.constant 0 : index
    %169 = vector.load %arg4[%c0_197, %c0_198] : memref<8x8xbf16, #tpu.memory_space<vmem>>, vector<8x8xbf16>
    %cst_199 = arith.constant dense<0.000000e+00> : vector<128x8xf32>
    %170 = tpu.matmul %168, %169, %cst_199 {dimension_numbers = #tpu.dot_dimension_numbers<[1], [0], [0], [1], [0, 0, 1, 1], [], []>} : vector<128x8xbf16>, vector<8x8xbf16>, vector<128x8xf32> -> vector<128x8xf32>
    %c4_200 = arith.constant 4 : index
    %c0_201 = arith.constant 0 : index
    %171 = vector.load %arg5[%c4_200, %c0_201] : memref<5x8xf32, #tpu.memory_space<vmem>>, vector<1x8xf32>
    %172 = vector.broadcast %171 : vector<1x8xf32> to vector<128x8xf32>
    %173 = arith.addf %170, %172 : vector<128x8xf32>
    %cst_202 = arith.constant 0.000000e+00 : f32
    %174 = vector.broadcast %cst_202 : f32 to vector<128x8xf32>
    %175 = arith.maximumf %173, %174 : vector<128x8xf32>
    %176 = tpu.transpose %175, [1, 0] : vector<128x8xf32> -> vector<8x128xf32>
    %c0_203 = arith.constant 0 : index
    %c0_204 = arith.constant 0 : index
    %c0_205 = arith.constant 0 : index
    %177 = vector.load %arg6[%c0_203, %c0_204, %c0_205] : memref<1x8x128xf32, #tpu.memory_space<vmem>>, vector<1x8x128xf32>
    %178 = vector.shape_cast %177 : vector<1x8x128xf32> to vector<8x128xf32>
    %179 = vector.shape_cast %176 : vector<8x128xf32> to vector<1x8x128xf32>
    tpu.vector_store %arg6[%c0_203, %c0_204, %c0_205], %179 {strides = array<i32>} : memref<1x8x128xf32, #tpu.memory_space<vmem>>, vector<1x8x128xf32>,
    return
  }
  func.func @transform_0(%arg0: i32) -> (i32, i32, i32, i32) {
    %c0_i32 = arith.constant 0 : i32
    %c0_i32_0 = arith.constant 0 : i32
    %c0_i32_1 = arith.constant 0 : i32
    %c0_i32_2 = arith.constant 0 : i32
    return %arg0, %c0_i32, %c0_i32_0, %c0_i32_1 : i32, i32, i32, i32
  }
  func.func @transform_1(%arg0: i32) -> (i32, i32, i32) {
    %c0_i32 = arith.constant 0 : i32
    %c0_i32_0 = arith.constant 0 : i32
    %c0_i32_1 = arith.constant 0 : i32
    %c0_i32_2 = arith.constant 0 : i32
    return %c0_i32, %c0_i32_0, %c0_i32_1 : i32, i32, i32
  }
  func.func @transform_2(%arg0: i32) -> (i32, i32, i32) {
    %c0_i32 = arith.constant 0 : i32
    %c0_i32_0 = arith.constant 0 : i32
    %c0_i32_1 = arith.constant 0 : i32
    %c0_i32_2 = arith.constant 0 : i32
    return %c0_i32, %c0_i32_0, %c0_i32_1 : i32, i32, i32
  }
  func.func @transform_3(%arg0: i32) -> (i32, i32) {
    %c0_i32 = arith.constant 0 : i32
    %c0_i32_0 = arith.constant 0 : i32
    %c0_i32_1 = arith.constant 0 : i32
    return %c0_i32, %c0_i32_0 : i32, i32
  }
  func.func @transform_4(%arg0: i32) -> (i32, i32) {
    %c0_i32 = arith.constant 0 : i32
    %c0_i32_0 = arith.constant 0 : i32
    %c0_i32_1 = arith.constant 0 : i32
    return %c0_i32, %c0_i32_0 : i32, i32
  }
  func.func @transform_5(%arg0: i32) -> (i32, i32, i32) {
    %c0_i32 = arith.constant 0 : i32
    %c0_i32_0 = arith.constant 0 : i32
    %c0_i32_1 = arith.constant 0 : i32
    return %arg0, %c0_i32, %c0_i32_0 : i32, i32, i32
  }
}

</mosaic_0001>

<bundles_post_ra>
// kernel: aideck_block_forward.1
= control target key start
LH: loop header
LB: loop body
LE: loop exit
PB: predicated region body
PF: predicated region fallthrough
CT: control target
= control target key end

     0   :  { %vm393_vm0 = vcmask 1041408   ;;  %vm21_vm1 = vcmask 31744   ;;  %vm23_vm2 = vcmask 25600   ;;  %v4627_v1 = vmov 0.0   ;;  %s5879_s1 = inlined_call_operand.vmem [shape: bf16[9,4,8], index: 1, kind: input, shape index: {}]   ;;  %s5880_s0 = inlined_call_operand.vmem [shape: f32[2,16,16,4], index: 0, kind: input, shape index: {}]   ;;  %s5881_s2 = inlined_call_operand.vmem [shape: bf16[9,8,8], index: 2, kind: input, shape index: {}]   ;;  %s5882_s4 = inlined_call_operand.vmem [shape: f32[5,8], index: 4, kind: input, shape index: {}]   ;;  %s5883_s3 = inlined_call_operand.vmem [shape: bf16[8,8], index: 3, kind: input, shape index: {}]   ;;  %s5884_s5 = inlined_call_operand.vmem [shape: f32[1,8,128], index: 5, kind: output, shape index: {}]  }
   0x1   :  { %v3662_v0 = vld [vmem:[%s5879_s1 + $0x2] sm:$0x3]  ;;  %22 = vst.msk [vmem:[#allocation2] sm:$0xff] %vm21_vm1, %v4627_v1  ;;  %vm32_vm3 = vcmask 24576   ;;  %25 = vst.msk [vmem:[#allocation2 + $0xa0] sm:$0xff] %vm21_vm1, %v4627_v1  ;;  %vm73_vm4 = vcmask 64512  }
   0x2   :  { %24 = vst.msk [vmem:[#allocation2 + $0x8] sm:$0x3] %vm23_vm2, %v4627_v1  ;;  %v4667_v2 = vld [vmem:[%s5880_s0] ss:$2 sm:$0xff]  ;;  %26 = vst.msk [vmem:[#allocation2 + $0xa8] sm:$0x3] %vm23_vm2, %v4627_v1  ;;  %4606 = vmatprep.subr.msk.bf16.mxu0 %vm393_vm0, %v3662_v0  ;;  %4607 = vmatprep.subr.msk.bf16.mxu1 %vm393_vm0, %v3662_v0 }
   0x3   :  { %28 = vst.msk [vmem:[#allocation2 + $0x90] sm:$0xff] %vm21_vm1, %v4627_v1  ;;  %30 = vst.msk [vmem:[#allocation2 + $0x130] sm:$0xff] %vm21_vm1, %v4627_v1  ;;  %v395_v3 = vsel %vm393_vm0, %v3662_v0, 0  ;;  %v3599_v4 = vld [vmem:[%s5880_s0 + $0x10] ss:$2 sm:$0xff]  ;;  %vm75_vm5 = vcmask 58368  }
   0x4   :  { %29 = vst.msk [vmem:[#allocation2 + $0x98] sm:$0x3] %vm23_vm2, %v4627_v1  ;;  %31 = vst.msk [vmem:[#allocation2 + $0x138] sm:$0x3] %vm23_vm2, %v4627_v1  ;;  %v3630_v5 = vld [vmem:[%s5880_s0 + $0x1] ss:$2 sm:$0xff]  ;;  %4007 = vmatpush3.bf16.msra.mxu0 %v395_v3  ;;  %4349 = vmatpush3.bf16.msra.mxu1 %v395_v3 }
   0x5   :  { %33 = vst.msk [vmem:[#allocation2] sm:$0x1] %vm32_vm3, %v4627_v1  ;;  %53 = vst.msk [vmem:[#allocation2 + $0x9] sm:$0x1] %vm32_vm3, %v4627_v1  ;;  %v3631_v6 = vld [vmem:[%s5880_s0 + $0x11] ss:$2 sm:$0xff]  ;;  %v252_v7 = vmax.f32 %v4667_v2, %v3630_v5 }
   0x6   :  { %34 = vst.msk [vmem:[#allocation2 + $0x10] sm:$0x1] %vm32_vm3, %v4627_v1  ;;  %35 = vst.msk [vmem:[#allocation2 + $0x20] sm:$0x1] %vm32_vm3, %v4627_v1  ;;  %v4774_v8 = vld [vmem:[%s5879_s1] sm:$0x3]  ;;  %v253_v10 = vmax.f32 %v3599_v4, %v3631_v6 }
   0x7   :  { %36 = vst.msk [vmem:[#allocation2 + $0x30] sm:$0x1] %vm32_vm3, %v4627_v1  ;;  %37 = vst.msk [vmem:[#allocation2 + $0x40] sm:$0x1] %vm32_vm3, %v4627_v1  ;;  %v3600_v9 = vld [vmem:[%s5880_s0 + $0x20] ss:$2 sm:$0xff]  ;;  %4608 = vmatprep.subr.msk.bf16.mxu0 %vm393_vm0, %v4774_v8 }
   0x8   :  { %38 = vst.msk [vmem:[#allocation2 + $0x50] sm:$0x1] %vm32_vm3, %v4627_v1  ;;  %39 = vst.msk [vmem:[#allocation2 + $0x60] sm:$0x1] %vm32_vm3, %v4627_v1  ;;  %v3601_v11 = vld [vmem:[%s5880_s0 + $0x30] ss:$2 sm:$0xff]  ;;  %v284_v17 = vmax.f32 %v252_v7, %v253_v10 }
   0x9   :  { %40 = vst.msk [vmem:[#allocation2 + $0x70] sm:$0x1] %vm32_vm3, %v4627_v1  ;;  %41 = vst.msk [vmem:[#allocation2 + $0x80] sm:$0x1] %vm32_vm3, %v4627_v1  ;;  %v3602_v12 = vld [vmem:[%s5880_s0 + $0x40] ss:$2 sm:$0xff] }
   0xa   :  { %44 = vst.msk [vmem:[#allocation2 + $0xb0] sm:$0x1] %vm32_vm3, %v4627_v1  ;;  %45 = vst.msk [vmem:[#allocation2 + $0xc0] sm:$0x1] %vm32_vm3, %v4627_v1  ;;  %v3603_v13 = vld [vmem:[%s5880_s0 + $0x50] ss:$2 sm:$0xff] }
   0xb   :  { %46 = vst.msk [vmem:[#allocation2 + $0xd0] sm:$0x1] %vm32_vm3, %v4627_v1  ;;  %47 = vst.msk [vmem:[#allocation2 + $0xe0] sm:$0x1] %vm32_vm3, %v4627_v1  ;;  %v3632_v14 = vld [vmem:[%s5880_s0 + $0x21] ss:$2 sm:$0xff] }
   0xc   :  { %48 = vst.msk [vmem:[#allocation2 + $0xf0] sm:$0x1] %vm32_vm3, %v4627_v1  ;;  %49 = vst.msk [vmem:[#allocation2 + $0x100] sm:$0x1] %vm32_vm3, %v4627_v1  ;;  %v3633_v15 = vld [vmem:[%s5880_s0 + $0x31] ss:$2 sm:$0xff]  ;;  %v254_v19 = vmax.f32 %v3600_v9, %v3632_v14 }
   0xd   :  { %50 = vst.msk [vmem:[#allocation2 + $0x110] sm:$0x1] %vm32_vm3, %v4627_v1  ;;  %51 = vst.msk [vmem:[#allocation2 + $0x120] sm:$0x1] %vm32_vm3, %v4627_v1  ;;  %v3634_v16 = vld [vmem:[%s5880_s0 + $0x41] ss:$2 sm:$0xff]  ;;  %v255_v20 = vmax.f32 %v3601_v11, %v3633_v15 }
   0xe   :  { %54 = vst.msk [vmem:[#allocation2 + $0x19] sm:$0x1] %vm32_vm3, %v4627_v1  ;;  %55 = vst.msk [vmem:[#allocation2 + $0x29] sm:$0x1] %vm32_vm3, %v4627_v1  ;;  %v3635_v18 = vld [vmem:[%s5880_s0 + $0x51] ss:$2 sm:$0xff]  ;;  %v256_v21 = vmax.f32 %v3602_v12, %v3634_v16 }
   0xf   :  { %56 = vst.msk [vmem:[#allocation2 + $0x39] sm:$0x1] %vm32_vm3, %v4627_v1  ;;  %57 = vst.msk [vmem:[#allocation2 + $0x49] sm:$0x1] %vm32_vm3, %v4627_v1  ;;  %v3604_v22 = vld [vmem:[%s5880_s0 + $0x60] ss:$2 sm:$0xff]  ;;  %v257_v24 = vmax.f32 %v3603_v13, %v3635_v18  ;;  %v285_v27 = vmax.f32 %v254_v19, %v255_v20 }
  0x10   :  { %58 = vst.msk [vmem:[#allocation2 + $0x59] sm:$0x1] %vm32_vm3, %v4627_v1  ;;  %59 = vst.msk [vmem:[#allocation2 + $0x69] sm:$0x1] %vm32_vm3, %v4627_v1  ;;  %v3605_v23 = vld [vmem:[%s5880_s0 + $0x70] ss:$2 sm:$0xff] }
  0x11   :  { %60 = vst.msk [vmem:[#allocation2 + $0x79] sm:$0x1] %vm32_vm3, %v4627_v1  ;;  %61 = vst.msk [vmem:[#allocation2 + $0x89] sm:$0x1] %vm32_vm3, %v4627_v1  ;;  %v3606_v25 = vld [vmem:[%s5880_s0 + $0x80] ss:$2 sm:$0xff]  ;;  %v286_v30 = vmax.f32 %v256_v21, %v257_v24 }
  0x12   :  { %64 = vst.msk [vmem:[#allocation2 + $0xb9] sm:$0x1] %vm32_vm3, %v4627_v1  ;;  %65 = vst.msk [vmem:[#allocation2 + $0xc9] sm:$0x1] %vm32_vm3, %v4627_v1  ;;  %v3607_v26 = vld [vmem:[%s5880_s0 + $0x90] ss:$2 sm:$0xff] }
  0x13   :  { %66 = vst.msk [vmem:[#allocation2 + $0xd9] sm:$0x1] %vm32_vm3, %v4627_v1  ;;  %67 = vst.msk [vmem:[#allocation2 + $0xe9] sm:$0x1] %vm32_vm3, %v4627_v1  ;;  %v3636_v28 = vld [vmem:[%s5880_s0 + $0x61] ss:$2 sm:$0xff] }
  0x14   :  { %68 = vst.msk [vmem:[#allocation2 + $0xf9] sm:$0x1] %vm32_vm3, %v4627_v1  ;;  %69 = vst.msk [vmem:[#allocation2 + $0x109] sm:$0x1] %vm32_vm3, %v4627_v1  ;;  %v3637_v29 = vld [vmem:[%s5880_s0 + $0x71] ss:$2 sm:$0xff]  ;;  %v258_v33 = vmax.f32 %v3604_v22, %v3636_v28 }
  0x15   :  { %70 = vst.msk [vmem:[#allocation2 + $0x119] sm:$0x1] %vm32_vm3, %v4627_v1  ;;  %71 = vst.msk [vmem:[#allocation2 + $0x129] sm:$0x1] %vm32_vm3, %v4627_v1  ;;  %v3638_v31 = vld [vmem:[%s5880_s0 + $0x81] ss:$2 sm:$0xff]  ;;  %v259_v34 = vmax.f32 %v3605_v23, %v3637_v29 }
  0x16   :  { %42 = vst.msk [vmem:[#allocation2 + $0x90] sm:$0x1] %vm32_vm3, %v4627_v1  ;;  %43 = vst.msk [vmem:[#allocation2 + $0xa0] sm:$0x1] %vm32_vm3, %v4627_v1  ;;  %v3639_v32 = vld [vmem:[%s5880_s0 + $0x91] ss:$2 sm:$0xff]  ;;  %v260_v36 = vmax.f32 %v3606_v25, %v3638_v31 }
  0x17   :  { %52 = vst.msk [vmem:[#allocation2 + $0x130] sm:$0x1] %vm32_vm3, %v4627_v1  ;;  %62 = vst.msk [vmem:[#allocation2 + $0x99] sm:$0x1] %vm32_vm3, %v4627_v1  ;;  %v3608_v35 = vld [vmem:[%s5880_s0 + $0xa0] ss:$2 sm:$0xff]  ;;  %v261_v37 = vmax.f32 %v3607_v26, %v3639_v32  ;;  %v287_v41 = vmax.f32 %v258_v33, %v259_v34 }
  0x18   :  { %63 = vst.msk [vmem:[#allocation2 + $0xa9] sm:$0x1] %vm32_vm3, %v4627_v1  ;;  %72 = vst.msk [vmem:[#allocation2 + $0x139] sm:$0x1] %vm32_vm3, %v4627_v1  ;;  %v3609_v38 = vld [vmem:[%s5880_s0 + $0xb0] ss:$2 sm:$0xff] }
  0x19   :  { %301 = vst.msk [vmem:[#allocation2 + $0x11] sm:$0xff] %vm21_vm1, %v284_v17  ;;  %302 = vst.msk [vmem:[#allocation2 + $0x21] sm:$0xff] %vm21_vm1, %v285_v27  ;;  %v3610_v39 = vld [vmem:[%s5880_s0 + $0xc0] ss:$2 sm:$0xff]  ;;  %v3611_v40 = vld [vmem:[%s5880_s0 + $0xd0] ss:$2 sm:$0xff]  ;;  %v288_v45 = vmax.f32 %v260_v36, %v261_v37 }
  0x1a   :  { %303 = vst.msk [vmem:[#allocation2 + $0x31] sm:$0xff] %vm21_vm1, %v286_v30  ;;  %v3640_v42 = vld [vmem:[%s5880_s0 + $0xa1] ss:$2 sm:$0xff]  ;;  %v3641_v43 = vld [vmem:[%s5880_s0 + $0xb1] ss:$2 sm:$0xff]  ;;  %304 = vst.msk [vmem:[#allocation2 + $0x41] sm:$0xff] %vm21_vm1, %v287_v41 }
  0x1b   :  { %v3642_v44 = vld [vmem:[%s5880_s0 + $0xc1] ss:$2 sm:$0xff]  ;;  %v3643_v46 = vld [vmem:[%s5880_s0 + $0xd1] ss:$2 sm:$0xff]  ;;  %v262_v47 = vmax.f32 %v3608_v35, %v3640_v42  ;;  %v263_v48 = vmax.f32 %v3609_v38, %v3641_v43  ;;  %v3614_v52 = vld [vmem:[%s5880_s0 + $0x100] ss:$2 sm:$0xff] }
  0x1c   :  { %v264_v49 = vmax.f32 %v3610_v39, %v3642_v44  ;;  %v343_v50 = vld [vmem:[#allocation2 + $0x1] sm:$0xff]  ;;  %v265_v51 = vmax.f32 %v3611_v40, %v3643_v46  ;;  %v3615_v53 = vld [vmem:[%s5880_s0 + $0x110] ss:$2 sm:$0xff]  ;;  %305 = vst.msk [vmem:[#allocation2 + $0x51] sm:$0xff] %vm21_vm1, %v288_v45  ;;  %v3647_v56 = vld [vmem:[%s5880_s0 + $0x111] ss:$2 sm:$0xff] }
  0x1d   :  { %v289_v54 = vmax.f32 %v262_v47, %v263_v48  ;;  %v3646_v55 = vld [vmem:[%s5880_s0 + $0x101] ss:$2 sm:$0xff]  ;;  %v3616_v57 = vld [vmem:[%s5880_s0 + $0x120] ss:$2 sm:$0xff]  ;;  %v269_v61 = vmax.f32 %v3615_v53, %v3647_v56  ;;  %v3617_v62 = vld [vmem:[%s5880_s0 + $0x130] ss:$2 sm:$0xff] }
  0x1e   :  { %v290_v59 = vmax.f32 %v264_v49, %v265_v51  ;;  %v268_v60 = vmax.f32 %v3614_v52, %v3646_v55  ;;  %v3618_v0 = vld [vmem:[%s5880_s0 + $0x140] ss:$2 sm:$0xff]  ;;  %v3648_v2 = vld [vmem:[%s5880_s0 + $0x121] ss:$2 sm:$0xff]  ;;  %v3619_v5 = vld [vmem:[%s5880_s0 + $0x150] ss:$2 sm:$0xff] }
  0x1f   :  { %306 = vst.msk [vmem:[#allocation2 + $0x61] sm:$0xff] %vm21_vm1, %v289_v54  ;;  %v3649_v6 = vld [vmem:[%s5880_s0 + $0x131] ss:$2 sm:$0xff]  ;;  %v270_v7 = vmax.f32 %v3616_v57, %v3648_v2  ;;  %v519_v10 = vsel %vm393_vm0, %v4774_v8, 0  ;;  %v3650_v11 = vld [vmem:[%s5880_s0 + $0x141] ss:$2 sm:$0xff] }
  0x20   :  { %v4870_v58 = vld [vmem:[#allocation2 + $0x11] sm:$0xff]  ;;  %v4883_v3 = vld [vmem:[#allocation2 + $0x21] sm:$0xff]  ;;  %307 = vst.msk [vmem:[#allocation2 + $0x71] sm:$0xff] %vm21_vm1, %v290_v59  ;;  %v292_v4 = vmax.f32 %v268_v60, %v269_v61  ;;  %v271_v12 = vmax.f32 %v3617_v62, %v3649_v6  ;;  %v272_v16 = vmax.f32 %v3618_v0, %v3650_v11  ;;  %vm84_vm6 = vcmask 57344  }
  0x21   :  { %v359_v63 = vpack.c.bf16 %v4870_v58, %v343_v50  ;;  %v4893_v9 = vld [vmem:[#allocation2 + $0x31] sm:$0xff]  ;;  %v966_v13 = vpack.c.bf16 %v4883_v3, %v4870_v58  ;;  %v4909_v15 = vld [vmem:[%s5879_s1 + $0x4] sm:$0x3]  ;;  %74 = vst.msk [vmem:[#allocation3] sm:$0xff] %vm73_vm4, %v4627_v1  ;;  %77 = vst.msk [vmem:[#allocation3 + $0xa0] sm:$0xff] %vm73_vm4, %v4627_v1  ;;  %vm1910_vm7 = vcmask 1043456  }
  0x22   :  { %v4904_v14 = vpack.c.bf16 %v4893_v9, %v4883_v3  ;;  %309 = vst.msk [vmem:[#allocation2 + $0xb1] sm:$0xff] %vm21_vm1, %v292_v4  ;;  %v3651_v8 = vld [vmem:[%s5880_s0 + $0x151] ss:$2 sm:$0xff]  ;;  %v3620_v17 = vld [vmem:[%s5880_s0 + $0x160] ss:$2 sm:$0xff]  ;;  %v293_v20 = vmax.f32 %v270_v7, %v271_v12 }
  0x23   :  { %4008 = vmatprep.mubr.msk.bf16.mxu0 %vm21_vm1, %v359_v63  ;;  %v4918_v18 = vld [vmem:[#allocation2 + $0x41] sm:$0xff]  ;;  %v273_v19 = vmax.f32 %v3619_v5, %v3651_v8  ;;  %v3621_v21 = vld [vmem:[%s5880_s0 + $0x170] ss:$2 sm:$0xff]  ;;  %v3653_v30 = vld [vmem:[%s5880_s0 + $0x171] ss:$2 sm:$0xff]  ;;  %80 = vst.msk [vmem:[#allocation3 + $0x90] sm:$0xff] %vm73_vm4, %v4627_v1 }
  0x24   :  { %v3622_v22 = vld [vmem:[%s5880_s0 + $0x180] ss:$2 sm:$0xff]  ;;  %4009 = vmatmul.mubr.msk.bf16.vlgmr.msra.gmra.mrb[0].mxu0 %vm21_vm1, %v4904_v14  ;;  %v4928_v23 = vld [vmem:[#allocation2 + $0x51] sm:$0xff]  ;;  %v967_v26 = vpack.c.bf16 %v4918_v18, %v4893_v9  ;;  %310 = vst.msk [vmem:[#allocation2 + $0xc1] sm:$0xff] %vm21_vm1, %v293_v20  ;;  %v3652_v29 = vld [vmem:[%s5880_s0 + $0x161] ss:$2 sm:$0xff]  ;;  %v275_v36 = vmax.f32 %v3621_v21, %v3653_v30 }
  0x25   :  { %v318_v24 = vld [vmem:[#allocation2] sm:$0xff]  ;;  %v3623_v25 = vld [vmem:[%s5880_s0 + $0x190] ss:$2 sm:$0xff]  ;;  %4025 = vmatpush3.bf16.msra.mxu0 %v519_v10  ;;  %v4937_v27 = vpack.c.bf16 %v4928_v23, %v4918_v18  ;;  %v294_v28 = vmax.f32 %v272_v16, %v273_v19  ;;  %v3655_v34 = vld [vmem:[%s5880_s0 + $0x191] ss:$2 sm:$0xff]  ;;  %v274_v35 = vmax.f32 %v3620_v17, %v3652_v29  ;;  %v669_v17 = vsel %vm393_vm0, %v4909_v15, 0 }
  0x26   :  { %v3654_v31 = vld [vmem:[%s5880_s0 + $0x181] ss:$2 sm:$0xff]  ;;  %v4951_v33 = vld [vmem:[#allocation2 + $0x10] sm:$0xff]  ;;  %4609 = vmatprep.subr.msk.bf16.mxu0 %vm393_vm0, %v4909_v15  ;;  %v277_v39 = vmax.f32 %v3623_v25, %v3655_v34  ;;  %v3624_v40 = vld [vmem:[%s5880_s0 + $0x1a0] ss:$2 sm:$0xff]  ;;  %82 = vst.msk [vmem:[#allocation3 + $0x130] sm:$0xff] %vm73_vm4, %v4627_v1 }
  0x27   :  { %v4949_v32 = vld [vmem:[#allocation2 + $0x61] sm:$0xff]  ;;  %v276_v37 = vmax.f32 %v3622_v22, %v3654_v31  ;;  %4012 = vmatprep.mubr.msk.bf16.mxu0 %vm21_vm1, %v4937_v27  ;;  %v4960_v38 = vld [vmem:[#allocation2 + $0x71] sm:$0xff]  ;;  %311 = vst.msk [vmem:[#allocation2 + $0xd1] sm:$0xff] %vm21_vm1, %v294_v28  ;;  %v295_v43 = vmax.f32 %v274_v35, %v275_v36  ;;  %v334_v47 = vpack.c.bf16 %v4951_v33, %v318_v24 }
  0x28   :  { %v968_v41 = vpack.c.bf16 %v4949_v32, %v4928_v23  ;;  %v4970_v42 = vpack.c.bf16 %v4960_v38, %v4949_v32  ;;  %v3625_v44 = vld [vmem:[%s5880_s0 + $0x1b0] ss:$2 sm:$0xff]  ;;  %v3626_v45 = vld [vmem:[%s5880_s0 + $0x1c0] ss:$2 sm:$0xff]  ;;  %v3656_v49 = vld [vmem:[%s5880_s0 + $0x1a1] ss:$2 sm:$0xff] }
  0x29   :  { %v3627_v46 = vld [vmem:[%s5880_s0 + $0x1d0] ss:$2 sm:$0xff]  ;;  %v296_v48 = vmax.f32 %v276_v37, %v277_v39  ;;  %v3657_v50 = vld [vmem:[%s5880_s0 + $0x1b1] ss:$2 sm:$0xff]  ;;  %312 = vst.msk [vmem:[#allocation2 + $0xe1] sm:$0xff] %vm21_vm1, %v295_v43  ;;  %v278_v53 = vmax.f32 %v3624_v40, %v3656_v49  ;;  %v4998_v59 = vld [vmem:[#allocation2 + $0x22] sm:$0xff] }
  0x2a   :  { %v3658_v51 = vld [vmem:[%s5880_s0 + $0x1c1] ss:$2 sm:$0xff]  ;;  %v3659_v52 = vld [vmem:[%s5880_s0 + $0x1d1] ss:$2 sm:$0xff]  ;;  %v279_v54 = vmax.f32 %v3625_v44, %v3657_v50  ;;  %v3612_v11 = vld [vmem:[%s5880_s0 + $0xe0] ss:$2 sm:$0xff] }
  0x2b   :  { %313 = vst.msk [vmem:[#allocation2 + $0xf1] sm:$0xff] %vm21_vm1, %v296_v48  ;;  %v280_v55 = vmax.f32 %v3626_v45, %v3658_v51  ;;  %v281_v56 = vmax.f32 %v3627_v46, %v3659_v52  ;;  %v4996_v57 = vld [vmem:[#allocation2 + $0x12] sm:$0xff]  ;;  %v5004_v62 = vld [vmem:[#allocation2 + $0x42] sm:$0xff] }
  0x2c   :  { %4013 = vmatmul.mubr.msk.bf16.gmra.mrb[4].mxu0 %vm21_vm1, %v4970_v42  ;;  %v297_v60 = vmax.f32 %v278_v53, %v279_v54  ;;  %v5002_v61 = vld [vmem:[#allocation2 + $0x32] sm:$0xff]  ;;  %v1132_v63 = vpack.c.bf16 %v4998_v59, %v4996_v57  ;;  %v5009_v0 = vld [vmem:[#allocation2 + $0x20] sm:$0xff]  ;;  %v3706_v54 = vld [vmem:[%s5879_s1 + $0xa] sm:$0x3]  ;;  %76 = vst.msk [vmem:[#allocation3 + $0x8] sm:$0x3] %vm75_vm5, %v4627_v1 }
  0x2d   :  { %4026 = vmatprep.mubr.msk.bf16.mxu0 %vm21_vm1, %v334_v47  ;;  %v5011_v2 = vld [vmem:[#allocation2 + $0x30] sm:$0xff]  ;;  %v298_v4 = vmax.f32 %v280_v55, %v281_v56  ;;  %v1133_v5 = vpack.c.bf16 %v5004_v62, %v5002_v61  ;;  %v5015_v6 = vld [vmem:[#allocation2 + $0x40] sm:$0xff]  ;;  %78 = vst.msk [vmem:[#allocation3 + $0xa8] sm:$0x3] %vm75_vm5, %v4627_v1  ;;  %81 = vst.msk [vmem:[#allocation3 + $0x98] sm:$0x3] %vm75_vm5, %v4627_v1 }
  0x2e   :  { %v5017_v7 = vld [vmem:[#allocation2 + $0x50] sm:$0xff]  ;;  %314 = vst.msk [vmem:[#allocation2 + $0x101] sm:$0xff] %vm21_vm1, %v297_v60  ;;  %v5023_v10 = vpack.c.bf16 %v5011_v2, %v5009_v0  ;;  %v3644_v16 = vld [vmem:[%s5880_s0 + $0xe1] ss:$2 sm:$0xff]  ;;  %v3628_v24 = vld [vmem:[%s5880_s0 + $0x1e0] ss:$2 sm:$0xff] }
  0x2f   :  { %315 = vst.msk [vmem:[#allocation2 + $0x111] sm:$0xff] %vm21_vm1, %v298_v4  ;;  %v3613_v12 = vld [vmem:[%s5880_s0 + $0xf0] ss:$2 sm:$0xff]  ;;  %v5033_v8 = vpack.c.bf16 %v5017_v7, %v5015_v6  ;;  %v3688_v19 = vld [vmem:[%s5879_s1 + $0x6] sm:$0x3]  ;;  %v266_v21 = vmax.f32 %v3612_v11, %v3644_v16 }
  0x30   :  { %v3645_v20 = vld [vmem:[%s5880_s0 + $0xf1] ss:$2 sm:$0xff]  ;;  %v3629_v25 = vld [vmem:[%s5880_s0 + $0x1f0] ss:$2 sm:$0xff]  ;;  %v3660_v15 = vld [vmem:[%s5880_s0 + $0x1e1] ss:$2 sm:$0xff] }
  0x31   :  { %v267_v22 = vmax.f32 %v3613_v12, %v3645_v20  ;;  %v5057_v28 = vld [vmem:[#allocation2 + $0x60] sm:$0xff]  ;;  %v3661_v29 = vld [vmem:[%s5880_s0 + $0x1f1] ss:$2 sm:$0xff]  ;;  %v282_v30 = vmax.f32 %v3628_v24, %v3660_v15  ;;  %83 = vst.msk [vmem:[#allocation3 + $0x138] sm:$0x3] %vm75_vm5, %v4627_v1 }
  0x32   :  { %v5064_v31 = vld [vmem:[#allocation2 + $0x70] sm:$0xff]  ;;  %v5068_v35 = vld [vmem:[#allocation2 + $0x62] sm:$0xff]  ;;  %v283_v37 = vmax.f32 %v3629_v25, %v3661_v29  ;;  %v5119_v25 = vpack.c.bf16 %v5002_v61, %v4998_v59  ;;  %v835_v29 = vsel %vm393_vm0, %v3688_v19, 0  ;;  %85 = vst.msk [vmem:[#allocation3] sm:$0x1] %vm84_vm6, %v4627_v1 }
  0x33   :  { %v5066_v34 = vld [vmem:[#allocation2 + $0x52] sm:$0xff]  ;;  %v291_v36 = vmax.f32 %v266_v21, %v267_v22  ;;  %v326_v39 = vld [vmem:[#allocation2 + $0xa0] sm:$0xff]  ;;  %v5078_v45 = vpack.c.bf16 %v5064_v31, %v5057_v28  ;;  %86 = vst.msk [vmem:[#allocation3 + $0x10] sm:$0x1] %vm84_vm6, %v4627_v1  ;;  %87 = vst.msk [vmem:[#allocation3 + $0x20] sm:$0x1] %vm84_vm6, %v4627_v1 }
  0x34   :  { %4027 = vmatmul.mubr.msk.bf16.vlgmr.msra.gmra.mrb[0].mxu0 %vm21_vm1, %v5023_v10  ;;  %v5070_v40 = vld [vmem:[#allocation2 + $0xb0] sm:$0xff]  ;;  %v1134_v43 = vpack.c.bf16 %v5068_v35, %v5066_v34  ;;  %v299_v44 = vmax.f32 %v282_v30, %v283_v37  ;;  %v5084_v48 = vld [vmem:[#allocation2 + $0xc2] sm:$0xff]  ;;  %v5123_v15 = vpack.c.bf16 %v5066_v34, %v5004_v62  ;;  %88 = vst.msk [vmem:[#allocation3 + $0x30] sm:$0x1] %vm84_vm6, %v4627_v1  ;;  %89 = vst.msk [vmem:[#allocation3 + $0x40] sm:$0x1] %vm84_vm6, %v4627_v1 }
  0x35   :  { %4043 = vmatpush3.bf16.msra.mxu0 %v669_v17  ;;  %4030 = vmatprep.mubr.msk.bf16.mxu0 %vm21_vm1, %v5033_v8  ;;  %308 = vst.msk [vmem:[#allocation2 + $0x81] sm:$0xff] %vm21_vm1, %v291_v36  ;;  %v338_v46 = vpack.c.bf16 %v5070_v40, %v326_v39  ;;  %v5082_v47 = vld [vmem:[#allocation2 + $0xb2] sm:$0xff]  ;;  %v5090_v50 = vld [vmem:[#allocation2 + $0xe2] sm:$0xff] }
  0x36   :  { %4610 = vmatprep.subr.msk.bf16.mxu0 %vm393_vm0, %v3688_v19  ;;  %316 = vst.msk [vmem:[#allocation2 + $0x121] sm:$0xff] %vm21_vm1, %v299_v44  ;;  %v5088_v49 = vld [vmem:[#allocation2 + $0xd2] sm:$0xff]  ;;  %v1136_v51 = vpack.c.bf16 %v5084_v48, %v5082_v47  ;;  %v328_v52 = vld [vmem:[#allocation2 + $0xc0] sm:$0xff]  ;;  %v3697_v30 = vld [vmem:[%s5879_s1 + $0x8] sm:$0x3] }
  0x37   :  { %v329_v53 = vld [vmem:[#allocation2 + $0xd0] sm:$0xff]  ;;  %v330_v55 = vld [vmem:[#allocation2 + $0xe0] sm:$0xff]  ;;  %v5146_v44 = vpack.c.bf16 %v5088_v49, %v5084_v48  ;;  %v1001_v16 = vsel %vm393_vm0, %v3697_v30, 0  ;;  %v5888_v61 = vpack.c.bf16 %v5090_v50, %v5088_v49  ;;  %90 = vst.msk [vmem:[#allocation3 + $0x50] sm:$0x1] %vm84_vm6, %v4627_v1 }
  0x38   :  { %v331_v56 = vld [vmem:[#allocation2 + $0xf0] sm:$0xff]  ;;  %v5097_v60 = vpack.c.bf16 %v329_v53, %v328_v52  ;;  %v5103_v12 = vld [vmem:[#allocation2 + $0x102] sm:$0xff]  ;;  %91 = vst.msk [vmem:[#allocation3 + $0x60] sm:$0x1] %vm84_vm6, %v4627_v1  ;;  %92 = vst.msk [vmem:[#allocation3 + $0x70] sm:$0x1] %vm84_vm6, %v4627_v1 }
  0x39   :  { %v5099_v4 = vpack.c.bf16 %v331_v56, %v330_v55  ;;  %v5101_v11 = vld [vmem:[#allocation2 + $0xf2] sm:$0xff]  ;;  %v332_v17 = vld [vmem:[#allocation2 + $0x100] sm:$0xff]  ;;  %93 = vst.msk [vmem:[#allocation3 + $0x80] sm:$0x1] %vm84_vm6, %v4627_v1  ;;  %94 = vst.msk [vmem:[#allocation3 + $0x90] sm:$0x1] %vm84_vm6, %v4627_v1 }
  0x3a   :  { %v333_v20 = vld [vmem:[#allocation2 + $0x110] sm:$0xff]  ;;  %v618_v21 = vld [vmem:[#allocation2 + $0x2] sm:$0xff]  ;;  %v5889_v62 = vpack.c.bf16 %v5103_v12, %v5101_v11  ;;  %95 = vst.msk [vmem:[#allocation3 + $0xa0] sm:$0x1] %vm84_vm6, %v4627_v1  ;;  %96 = vst.msk [vmem:[#allocation3 + $0xb0] sm:$0x1] %vm84_vm6, %v4627_v1 }
  0x3b   :  { %v5111_v22 = vpack.c.bf16 %v333_v20, %v332_v17  ;;  %v634_v24 = vpack.c.bf16 %v4996_v57, %v618_v21  ;;  %v5133_v36 = vld [vmem:[#allocation2 + $0x72] sm:$0xff]  ;;  %v626_v37 = vld [vmem:[#allocation2 + $0xa2] sm:$0xff]  ;;  %v3724_v57 = vld [vmem:[%s5879_s1 + $0xe] sm:$0x3]  ;;  %97 = vst.msk [vmem:[#allocation3 + $0xc0] sm:$0x1] %vm84_vm6, %v4627_v1 }
  0x3c   :  { %4031 = vmatmul.mubr.msk.bf16.gmra.mrb[4].mxu0 %vm21_vm1, %v5078_v45  ;;  %v5138_v39 = vpack.c.bf16 %v5133_v36, %v5068_v35  ;;  %v638_v19 = vpack.c.bf16 %v5082_v47, %v626_v37  ;;  %v5156_v21 = vld [vmem:[#allocation2 + $0x112] sm:$0xff]  ;;  %v801_v37 = vpack.c.bf16 %v5015_v6, %v5011_v2  ;;  %v804_v2 = vpack.c.bf16 %v328_v52, %v5070_v40  ;;  %v3715_v40 = vld [vmem:[%s5879_s1 + $0xc] sm:$0x3]  ;;  %v5207_v58 = vld [vmem:[#allocation2 + $0x81] sm:$0xff] }
  0x3d   :  { %4034 = vmatprep.mubr.msk.bf16.mxu0 %vm21_vm1, %v338_v46  ;;  %v5150_v46 = vpack.c.bf16 %v5101_v11, %v5090_v50  ;;  %v805_v6 = vpack.c.bf16 %v330_v55, %v329_v53  ;;  %v958_v3 = vld [vmem:[#allocation2 + $0xb1] sm:$0xff]  ;;  %v969_v52 = vpack.c.bf16 %v5207_v58, %v4960_v38  ;;  %v351_v9 = vld [vmem:[#allocation2 + $0xa1] sm:$0xff]  ;;  %v1500_v35 = vsel %vm393_vm0, %v3724_v57, 0  ;;  %98 = vst.msk [vmem:[#allocation3 + $0xd0] sm:$0x1] %vm84_vm6, %v4627_v1 }
  0x3e   :  { %v960_v18 = vld [vmem:[#allocation2 + $0xd1] sm:$0xff]  ;;  %v363_v23 = vpack.c.bf16 %v958_v3, %v351_v9  ;;  %v1123_v59 = vld [vmem:[#allocation2 + $0x82] sm:$0xff]  ;;  %99 = vst.msk [vmem:[#allocation3 + $0xe0] sm:$0x1] %vm84_vm6, %v4627_v1  ;;  %100 = vst.msk [vmem:[#allocation3 + $0xf0] sm:$0x1] %vm84_vm6, %v4627_v1 }
  0x3f   :  { %v962_v32 = vld [vmem:[#allocation2 + $0xf1] sm:$0xff]  ;;  %101 = vst.msk [vmem:[#allocation3 + $0x100] sm:$0x1] %vm84_vm6, %v4627_v1  ;;  %102 = vst.msk [vmem:[#allocation3 + $0x110] sm:$0x1] %vm84_vm6, %v4627_v1 }
  0x40   :  { %4016 = vmatprep.mubr.msk.bf16.mxu1 %vm21_vm1, %v363_v23  ;;  %v964_v38 = vld [vmem:[#allocation2 + $0x111] sm:$0xff]  ;;  %103 = vst.msk [vmem:[#allocation3 + $0x120] sm:$0x1] %vm84_vm6, %v4627_v1  ;;  %104 = vst.msk [vmem:[#allocation3 + $0x130] sm:$0x1] %vm84_vm6, %v4627_v1 }
  0x41   :  { %v1290_v47 = vld [vmem:[#allocation2 + $0x90] sm:$0xff]  ;;  %106 = vst.msk [vmem:[#allocation3 + $0x19] sm:$0x1] %vm84_vm6, %v4627_v1  ;;  %107 = vst.msk [vmem:[#allocation3 + $0x29] sm:$0x1] %vm84_vm6, %v4627_v1 }
  0x42   :  { %v1456_v49 = vld [vmem:[#allocation2 + $0x91] sm:$0xff]  ;;  %108 = vst.msk [vmem:[#allocation3 + $0x39] sm:$0x1] %vm84_vm6, %v4627_v1  ;;  %109 = vst.msk [vmem:[#allocation3 + $0x49] sm:$0x1] %vm84_vm6, %v4627_v1 }
  0x43   :  { %v1468_v50 = vpack.c.bf16 %v1456_v49, %v5207_v58  ;;  %110 = vst.msk [vmem:[#allocation3 + $0x59] sm:$0x1] %vm84_vm6, %v4627_v1  ;;  %111 = vst.msk [vmem:[#allocation3 + $0x69] sm:$0x1] %vm84_vm6, %v4627_v1  ;;  %v3743_v11 = vld [vmem:[%s5881_s2 + $0x4] sm:$0xf] }
  0x44   :  { %4035 = vmatmul.mubr.msk.bf16.gmra.mrb[8].mxu0 %vm21_vm1, %v5097_v60  ;;  %112 = vst.msk [vmem:[#allocation3 + $0x79] sm:$0x1] %vm84_vm6, %v4627_v1  ;;  %113 = vst.msk [vmem:[#allocation3 + $0x89] sm:$0x1] %vm84_vm6, %v4627_v1  ;;  %4616 = vmatprep.subr.msk.bf16.mxu1 %vm1910_vm7, %v3743_v11 }
  0x45   :  { %4038 = vmatprep.mubr.msk.bf16.mxu0 %vm21_vm1, %v5099_v4  ;;  %116 = vst.msk [vmem:[#allocation3 + $0xb9] sm:$0x1] %vm84_vm6, %v4627_v1  ;;  %117 = vst.msk [vmem:[#allocation3 + $0xc9] sm:$0x1] %vm84_vm6, %v4627_v1 }
  0x46   :  { %118 = vst.msk [vmem:[#allocation3 + $0xd9] sm:$0x1] %vm84_vm6, %v4627_v1  ;;  %119 = vst.msk [vmem:[#allocation3 + $0xe9] sm:$0x1] %vm84_vm6, %v4627_v1 }
  0x47   :  { %120 = vst.msk [vmem:[#allocation3 + $0xf9] sm:$0x1] %vm84_vm6, %v4627_v1  ;;  %121 = vst.msk [vmem:[#allocation3 + $0x109] sm:$0x1] %vm84_vm6, %v4627_v1 }
  0x48   :  { %122 = vst.msk [vmem:[#allocation3 + $0x119] sm:$0x1] %vm84_vm6, %v4627_v1  ;;  %123 = vst.msk [vmem:[#allocation3 + $0x129] sm:$0x1] %vm84_vm6, %v4627_v1 }
  0x49   :  { %105 = vst.msk [vmem:[#allocation3 + $0x9] sm:$0x1] %vm84_vm6, %v4627_v1  ;;  %114 = vst.msk [vmem:[#allocation3 + $0x99] sm:$0x1] %vm84_vm6, %v4627_v1 }
  0x4a   :  { %115 = vst.msk [vmem:[#allocation3 + $0xa9] sm:$0x1] %vm84_vm6, %v4627_v1  ;;  %124 = vst.msk [vmem:[#allocation3 + $0x139] sm:$0x1] %vm84_vm6, %v4627_v1 }
  0x4c   :  { %4039 = vmatmul.mubr.msk.bf16.gmra.mrb[12].mxu0 %vm21_vm1, %v5111_v22 }
  0x4d   :  { %4044 = vmatprep.mubr.msk.bf16.mxu0 %vm21_vm1, %v634_v24  ;;  %v5160_v24 = vpack.c.bf16 %v5156_v21, %v5103_v12  ;;  %v1912_v12 = vsel %vm1910_vm7, %v3743_v11, 0 }
  0x54   :  { %4045 = vmatmul.mubr.msk.bf16.vlgmr.msra.gmra.mrb[0].mxu0 %vm21_vm1, %v5119_v25 }
  0x55   :  { %4061 = vmatpush3.bf16.msra.mxu0 %v835_v29  ;;  %4048 = vmatprep.mubr.msk.bf16.mxu0 %vm21_vm1, %v5123_v15  ;;  %v800_v29 = vpack.c.bf16 %v5009_v0, %v4951_v33  ;;  %v5177_v33 = vld [vmem:[#allocation2 + $0x80] sm:$0xff] }
  0x56   :  { %4611 = vmatprep.subr.msk.bf16.mxu0 %vm393_vm0, %v3697_v30  ;;  %v803_v0 = vpack.c.bf16 %v5177_v33, %v5064_v31  ;;  %v1167_v31 = vsel %vm393_vm0, %v3706_v54, 0  ;;  %v1302_v48 = vpack.c.bf16 %v1290_v47, %v5177_v33 }
  0x5c   :  { %4049 = vmatmul.mubr.msk.bf16.gmra.mrb[4].mxu0 %vm21_vm1, %v5138_v39 }
  0x5d   :  { %4052 = vmatprep.mubr.msk.bf16.mxu0 %vm21_vm1, %v638_v19  ;;  %v802_v19 = vpack.c.bf16 %v5057_v28, %v5017_v7  ;;  %v806_v7 = vpack.c.bf16 %v332_v17, %v331_v56  ;;  %v5187_v28 = vld [vmem:[#allocation2 + $0x120] sm:$0xff] }
  0x64   :  { %4053 = vmatmul.mubr.msk.bf16.gmra.mrb[8].mxu0 %vm21_vm1, %v5146_v44 }
  0x65   :  { %4056 = vmatprep.mubr.msk.bf16.mxu0 %vm21_vm1, %v5150_v46 }
  0x6c   :  { %4057 = vmatmul.mubr.msk.bf16.gmra.mrb[12].mxu0 %vm21_vm1, %v5160_v24 }
  0x6d   :  { %4062 = vmatprep.mubr.msk.bf16.mxu0 %vm21_vm1, %v800_v29 }
  0x74   :  { %4063 = vmatmul.mubr.msk.bf16.vlgmr.msra.gmra.mrb[0].mxu0 %vm21_vm1, %v801_v37  ;;  %v1334_v37 = vsel %vm393_vm0, %v3715_v40, 0 }
  0x75   :  { %4079 = vmatpush3.bf16.msra.mxu0 %v1001_v16  ;;  %4066 = vmatprep.mubr.msk.bf16.mxu0 %vm21_vm1, %v802_v19  ;;  %v807_v16 = vpack.c.bf16 %v5187_v28, %v333_v20  ;;  %v965_v20 = vld [vmem:[#allocation2 + $0x121] sm:$0xff] }
  0x76   :  { %4612 = vmatprep.subr.msk.bf16.mxu0 %vm393_vm0, %v3706_v54  ;;  %v973_v29 = vpack.c.bf16 %v965_v20, %v964_v38 }
  0x7c   :  { %4067 = vmatmul.mubr.msk.bf16.gmra.mrb[4].mxu0 %vm21_vm1, %v803_v0 }
  0x7d   :  { %4070 = vmatprep.mubr.msk.bf16.mxu0 %vm21_vm1, %v804_v2 }
  0x84   :  { %4071 = vmatmul.mubr.msk.bf16.gmra.mrb[8].mxu0 %vm21_vm1, %v805_v6 }
  0x85   :  { %4074 = vmatprep.mubr.msk.bf16.mxu0 %vm21_vm1, %v806_v7 }
  0x8c   :  { %4075 = vmatmul.mubr.msk.bf16.gmra.mrb[12].mxu0 %vm21_vm1, %v807_v16 }
  0x8d   :  { %4080 = vmatprep.mubr.msk.bf16.mxu0 %vm21_vm1, %v966_v13  ;;  %v959_v13 = vld [vmem:[#allocation2 + $0xc1] sm:$0xff] }
  0x8e   :  { %v970_v53 = vpack.c.bf16 %v959_v13, %v958_v3  ;;  %v1469_v54 = vpack.c.bf16 %v960_v18, %v959_v13 }
  0x90   :  { %4017 = vmatmul.mubr.msk.bf16.vlgmr.msra.gmra.mrb[0].mxu1 %vm21_vm1, %v1469_v54 }
  0x91   :  { %4169 = vmatpush3.bf16.msra.mxu1 %v1912_v12 }
  0x94   :  { %4081 = vmatmul.mubr.msk.bf16.vlgmr.msra.gmra.mrb[0].mxu0 %vm21_vm1, %v967_v26  ;;  %v961_v26 = vld [vmem:[#allocation2 + $0xe1] sm:$0xff] }
  0x95   :  { %4097 = vmatpush3.bf16.msra.mxu0 %v1167_v31  ;;  %4084 = vmatprep.mubr.msk.bf16.mxu0 %vm21_vm1, %v968_v41  ;;  %v963_v41 = vld [vmem:[#allocation2 + $0x101] sm:$0xff]  ;;  %v1470_v55 = vpack.c.bf16 %v962_v32, %v961_v26  ;;  %v971_v56 = vpack.c.bf16 %v961_v26, %v960_v18 }
  0x96   :  { %4613 = vmatprep.subr.msk.bf16.mxu0 %vm393_vm0, %v3715_v40  ;;  %v972_v17 = vpack.c.bf16 %v963_v41, %v962_v32  ;;  %v1471_v30 = vpack.c.bf16 %v964_v38, %v963_v41  ;;  %v1860_v41 = vld [vmem:[#allocation3 + $0x1] sm:$0xff] }
  0x97   :  { %4020 = vmatprep.mubr.msk.bf16.mxu1 %vm21_vm1, %v1470_v55 }
  0x98   :  { %4021 = vmatmul.mubr.msk.bf16.gmra.mrb[4].mxu1 %vm21_vm1, %v1471_v30 }
  0x9c   :  { %4085 = vmatmul.mubr.msk.bf16.gmra.mrb[4].mxu0 %vm21_vm1, %v969_v52 }
  0x9d   :  { %4088 = vmatprep.mubr.msk.bf16.mxu0 %vm21_vm1, %v970_v53 }
  0xa4   :  { %4089 = vmatmul.mubr.msk.bf16.gmra.mrb[8].mxu0 %vm21_vm1, %v971_v56 }
  0xa5   :  { %4092 = vmatprep.mubr.msk.bf16.mxu0 %vm21_vm1, %v972_v17 }
  0xac   :  { %4093 = vmatmul.mubr.msk.bf16.gmra.mrb[12].mxu0 %vm21_vm1, %v973_v29 }
  0xad   :  { %4098 = vmatprep.mubr.msk.bf16.mxu0 %vm21_vm1, %v1132_v63  ;;  %v1135_v63 = vpack.c.bf16 %v1123_v59, %v5133_v36 }
  0xb4   :  { %4099 = vmatmul.mubr.msk.bf16.vlgmr.msra.gmra.mrb[0].mxu0 %vm21_vm1, %v1133_v5  ;;  %v1131_v5 = vld [vmem:[#allocation2 + $0x122] sm:$0xff] }
  0xb5   :  { %4115 = vmatpush3.bf16.msra.mxu0 %v1334_v37  ;;  %4102 = vmatprep.mubr.msk.bf16.mxu0 %vm21_vm1, %v1134_v43  ;;  %v1139_v34 = vpack.c.bf16 %v1131_v5, %v5156_v21  ;;  %v3733_v43 = vld [vmem:[%s5879_s1 + $0x10] sm:$0x3]  ;;  %v1859_v21 = vld [vmem:[%s5881_s2] sm:$0xf] }
  0xb6   :  { %4614 = vmatprep.subr.msk.bf16.mxu0 %vm393_vm0, %v3724_v57  ;;  %4617 = vmatprep.subr.msk.bf16.mxu1 %vm1910_vm7, %v1859_v21 }
  0xbc   :  { %4103 = vmatmul.mubr.msk.bf16.gmra.mrb[4].mxu0 %vm21_vm1, %v1135_v63 }
  0xbd   :  { %4106 = vmatprep.mubr.msk.bf16.mxu0 %vm21_vm1, %v1136_v51 }
  0xc4   :  { %4107 = vmatmul.mubr.msk.bf16.gmra.mrb[8].mxu0 %vm21_vm1, %v5888_v61 }
  0xc5   :  { %4110 = vmatprep.mubr.msk.bf16.mxu0 %vm21_vm1, %v5889_v62 }
  0xcc   :  { %4111 = vmatmul.mubr.msk.bf16.gmra.mrb[12].mxu0 %vm21_vm1, %v1139_v34 }
  0xcd   :  { %4116 = vmatprep.mubr.msk.bf16.mxu0 %vm21_vm1, %v5023_v10  ;;  %v1298_v10 = vld [vmem:[#allocation2 + $0x130] sm:$0xff] }
  0xd4   :  { %4117 = vmatmul.mubr.msk.bf16.vlgmr.msra.gmra.mrb[0].mxu0 %vm21_vm1, %v5033_v8  ;;  %v1306_v8 = vpack.c.bf16 %v1298_v10, %v5187_v28  ;;  %v5468_v10 = vld [vmem:[%s5881_s2 + $0x8] sm:$0xf] }
  0xd5   :  { %4133 = vmatpush3.bf16.msra.mxu0 %v1500_v35  ;;  %4120 = vmatprep.mubr.msk.bf16.mxu0 %vm21_vm1, %v5078_v45  ;;  %v1666_v45 = vsel %vm393_vm0, %v3733_v43, 0  ;;  %v2036_v35 = vsel %vm1910_vm7, %v1859_v21, 0 }
  0xd6   :  { %4615 = vmatprep.subr.msk.bf16.mxu0 %vm393_vm0, %v3733_v43 }
  0xdc   :  { %4121 = vmatmul.mubr.msk.bf16.gmra.mrb[4].mxu0 %vm21_vm1, %v1302_v48 }
  0xdd   :  { %4124 = vmatprep.mubr.msk.bf16.mxu0 %vm21_vm1, %v5097_v60  ;;  %v1630_v60 = vld [vmem:[#allocation2 + $0x132] sm:$0xff] }
  0xe4   :  { %4125 = vmatmul.mubr.msk.bf16.gmra.mrb[8].mxu0 %vm21_vm1, %v5099_v4  ;;  %v1638_v4 = vpack.c.bf16 %v1630_v60, %v1131_v5 }
  0xe5   :  { %4128 = vmatprep.mubr.msk.bf16.mxu0 %vm21_vm1, %v5111_v22 }
  0xec   :  { %4129 = vmatmul.mubr.msk.bf16.gmra.mrb[12].mxu0 %vm21_vm1, %v1306_v8 }
  0xed   :  { %4134 = vmatprep.mubr.msk.bf16.mxu0 %vm21_vm1, %v4904_v14  ;;  %v1464_v14 = vld [vmem:[#allocation2 + $0x131] sm:$0xff] }
  0xee   :  { %v1472_v51 = vpack.c.bf16 %v1464_v14, %v965_v20 }
  0xf4   :  { %4135 = vmatmul.mubr.msk.bf16.vlgmr.msra.gmra.mrb[0].mxu0 %vm21_vm1, %v4937_v27  ;;  %v1622_v27 = vld [vmem:[#allocation2 + $0x92] sm:$0xff] }
  0xf5   :  { %4151 = vmatpush3.bf16.msra.mxu0 %v1666_v45  ;;  %4138 = vmatprep.mubr.msk.bf16.mxu0 %vm21_vm1, %v4970_v42  ;;  %v1634_v42 = vpack.c.bf16 %v1622_v27, %v1123_v59 }
  0xfc   :  { %4139 = vmatmul.mubr.msk.bf16.gmra.mrb[4].mxu0 %vm21_vm1, %v1468_v50 }
  0xfd   :  { %4142 = vmatprep.mubr.msk.bf16.mxu0 %vm21_vm1, %v1469_v54 }
 0x104   :  { %4143 = vmatmul.mubr.msk.bf16.gmra.mrb[8].mxu0 %vm21_vm1, %v1470_v55 }
 0x105   :  { %4146 = vmatprep.mubr.msk.bf16.mxu0 %vm21_vm1, %v1471_v30 }
 0x10c   :  { %4147 = vmatmul.mubr.msk.bf16.gmra.mrb[12].mxu0 %vm21_vm1, %v1472_v51 }
 0x10d   :  { %4152 = vmatprep.mubr.msk.bf16.mxu0 %vm21_vm1, %v5119_v25 }
 0x114   :  { %4153 = vmatmul.mubr.msk.bf16.vlgmr.msra.gmra.mrb[0].mxu0 %vm21_vm1, %v5123_v15 }
 0x115   :  { %4156 = vmatprep.mubr.msk.bf16.mxu0 %vm21_vm1, %v5138_v39 }
 0x11c   :  { %4157 = vmatmul.mubr.msk.bf16.gmra.mrb[4].mxu0 %vm21_vm1, %v1634_v42 }
 0x11d   :  { %4160 = vmatprep.mubr.msk.bf16.mxu0 %vm21_vm1, %v5146_v44 }
 0x124   :  { %4161 = vmatmul.mubr.msk.bf16.gmra.mrb[8].mxu0 %vm21_vm1, %v5150_v46 }
 0x125   :  { %4164 = vmatprep.mubr.msk.bf16.mxu0 %vm21_vm1, %v5160_v24  ;;  %v5420_v24 = vld [vmem:[%s5882_s4] ss:$0 sm:$0xff] }
 0x12c   :  { %4165 = vmatmul.mubr.msk.bf16.gmra.mrb[12].mxu0 %vm21_vm1, %v1638_v4 }
 0x163   :  { %v4018_v22 = vpop.f32.mrb[0].mxu1 }
 0x164   :  { %v5399_v25 = vpop.f32.mrb[1].mxu1 }
 0x165   :  { %v5401_v15 = vpop.f32.mrb[2].mxu1 }
 0x166   :  { %v5403_v36 = vpop.f32.mrb[3].mxu1 }
 0x16b   :  { %v5405_v39 = vpop.f32.mrb[4].mxu1 }
 0x16c   :  { %v5407_v1 = vpop.f32.mrb[5].mxu1 }
 0x16d   :  { %v5409_v44 = vpop.f32.mrb[6].mxu1 }
 0x16e   :  { %v5411_v46 = vpop.f32.mrb[7].mxu1 }
 0x1e7   :  { %v4154_v19 = vpop.f32.mrb[0].mxu0 }
 0x1e8   :  { %v1787_v33 = vadd.f32 %v4154_v19, %v5420_v24  ;;  %v1702_v0 = vpop.f32.mrb[1].mxu0 }
 0x1e9   :  { %v1785_v2 = vadd.f32 %v5420_v24, %v1702_v0  ;;  %v4155_v6 = vpop.f32.mrb[2].mxu0 }
 0x1ea   :  { %v1803_v7 = vmax.f32 %v1787_v33, 0.0  ;;  %v1788_v28 = vadd.f32 %v4155_v6, %v5420_v24  ;;  %v1705_v16 = vpop.f32.mrb[3].mxu0 }
 0x1eb   :  { %v1801_v31 = vmax.f32 %v1785_v2, 0.0  ;;  %v1786_v40 = vadd.f32 %v5420_v24, %v1705_v16 }
 0x1ec   :  { %1820 = vst.msk [vmem:[#allocation3 + $0x31] sm:$0xff] %vm73_vm4, %v1803_v7  ;;  %v1804_v58 = vmax.f32 %v1788_v28, 0.0 }
 0x1ed   :  { %1818 = vst.msk [vmem:[#allocation3 + $0x11] sm:$0xff] %vm73_vm4, %v1801_v31  ;;  %v1802_v3 = vmax.f32 %v1786_v40, 0.0 }
 0x1ee   :  { %1821 = vst.msk [vmem:[#allocation3 + $0x41] sm:$0xff] %vm73_vm4, %v1804_v58 }
 0x1ef   :  { %1819 = vst.msk [vmem:[#allocation3 + $0x21] sm:$0xff] %vm73_vm4, %v1802_v3  ;;  %v4158_v13 = vpop.f32.mrb[4].mxu0 }
 0x1f0   :  { %v1791_v52 = vadd.f32 %v4158_v13, %v5420_v24  ;;  %v1718_v53 = vpop.f32.mrb[5].mxu0 }
 0x1f1   :  { %v1789_v9 = vadd.f32 %v5420_v24, %v1718_v53  ;;  %v4159_v18 = vpop.f32.mrb[6].mxu0 }
 0x1f2   :  { %v1807_v26 = vmax.f32 %v1791_v52, 0.0  ;;  %v1792_v23 = vadd.f32 %v4159_v18, %v5420_v24  ;;  %v1721_v32 = vpop.f32.mrb[7].mxu0 }
 0x1f3   :  { %v1805_v54 = vmax.f32 %v1789_v9, 0.0  ;;  %v1790_v55 = vadd.f32 %v5420_v24, %v1721_v32  ;;  %v5437_v38 = vld [vmem:[#allocation3 + $0x31] sm:$0xff] }
 0x1f4   :  { %1824 = vst.msk [vmem:[#allocation3 + $0x71] sm:$0xff] %vm73_vm4, %v1807_v26  ;;  %v1808_v56 = vmax.f32 %v1792_v23, 0.0  ;;  %v5435_v17 = vld [vmem:[#allocation3 + $0x11] sm:$0xff]  ;;  %v1868_v23 = vld [vmem:[#allocation3 + $0xa1] sm:$0xff] }
 0x1f5   :  { %1822 = vst.msk [vmem:[#allocation3 + $0x51] sm:$0xff] %vm73_vm4, %v1805_v54  ;;  %v1806_v20 = vmax.f32 %v1790_v55, 0.0  ;;  %v1876_v30 = vpack.c.bf16 %v5435_v17, %v1860_v41  ;;  %v5441_v29 = vld [vmem:[#allocation3 + $0x41] sm:$0xff]  ;;  %v5443_v37 = vld [vmem:[#allocation3 + $0x32] sm:$0xff] }
 0x1f6   :  { %v5445_v57 = vld [vmem:[#allocation3 + $0x42] sm:$0xff]  ;;  %1825 = vst.msk [vmem:[#allocation3 + $0x81] sm:$0xff] %vm73_vm4, %v1808_v56  ;;  %v5463_v43 = vld [vmem:[#allocation3 + $0x12] sm:$0xff] }
 0x1f7   :  { %v5448_v59 = vld [vmem:[#allocation3 + $0x21] sm:$0xff]  ;;  %1823 = vst.msk [vmem:[#allocation3 + $0x61] sm:$0xff] %vm73_vm4, %v1806_v20  ;;  %v4162_v5 = vpop.f32.mrb[8].mxu0  ;;  %4170 = vmatprep.mubr.msk.bf16.mxu1 %vm73_vm4, %v1876_v30 }
 0x1f8   :  { %v5450_v63 = vld [vmem:[#allocation3 + $0x22] sm:$0xff]  ;;  %v5460_v34 = vpack.c.bf16 %v5437_v38, %v5448_v59  ;;  %v4350_v47 = vadd.f32 %v4162_v5, %v4018_v22  ;;  %v1734_v48 = vpop.f32.mrb[9].mxu0 }
 0x1f9   :  { %v4351_v49 = vadd.f32 %v1734_v48, %v5399_v25  ;;  %v4163_v50 = vpop.f32.mrb[10].mxu0  ;;  %v5627_v40 = vpack.c.bf16 %v5443_v37, %v5450_v63 }
 0x1fa   :  { %4171 = vmatmul.mubr.msk.bf16.vlgmr.msra.gmra.mrb[8].mxu1 %vm73_vm4, %v5460_v34  ;;  %v1795_v14 = vadd.f32 %v4350_v47, %v5420_v24  ;;  %v4352_v51 = vadd.f32 %v4163_v50, %v5401_v15  ;;  %v1737_v27 = vpop.f32.mrb[11].mxu0 }
 0x1fb   :  { %4187 = vmatpush3.bf16.msra.mxu1 %v2036_v35  ;;  %v1793_v42 = vadd.f32 %v4351_v49, %v5420_v24  ;;  %v4353_v60 = vadd.f32 %v1737_v27, %v5403_v36  ;;  %v5494_v36 = vld [vmem:[#allocation3 + $0x71] sm:$0xff] }
 0x1fc   :  { %4618 = vmatprep.subr.msk.bf16.mxu1 %vm1910_vm7, %v5468_v10  ;;  %v1811_v4 = vmax.f32 %v1795_v14, 0.0  ;;  %v1796_v11 = vadd.f32 %v4352_v51, %v5420_v24  ;;  %v5484_v12 = vld [vmem:[#allocation3 + $0x51] sm:$0xff] }
 0x1fd   :  { %v1809_v22 = vmax.f32 %v1793_v42, 0.0  ;;  %v1794_v25 = vadd.f32 %v4353_v60, %v5420_v24  ;;  %v5489_v15 = vpack.c.bf16 %v5484_v12, %v5441_v29  ;;  %v5505_v7 = vld [vmem:[#allocation3 + $0x52] sm:$0xff]  ;;  %v1835_v42 = vld [vmem:[#allocation3] sm:$0xff] }
 0x1fe   :  { %1828 = vst.msk [vmem:[#allocation3 + $0xd1] sm:$0xff] %vm73_vm4, %v1811_v4  ;;  %v1812_v21 = vmax.f32 %v1796_v11, 0.0  ;;  %v5492_v19 = vld [vmem:[#allocation3 + $0x61] sm:$0xff]  ;;  %v5565_v60 = vld [vmem:[#allocation3 + $0x10] sm:$0xff]  ;;  %v5632_v45 = vpack.c.bf16 %v5505_v7, %v5445_v57 }
 0x1ff   :  { %v5496_v33 = vld [vmem:[#allocation3 + $0x62] sm:$0xff]  ;;  %1826 = vst.msk [vmem:[#allocation3 + $0xb1] sm:$0xff] %vm73_vm4, %v1809_v22  ;;  %v1810_v0 = vmax.f32 %v1794_v25, 0.0  ;;  %v4166_v2 = vpop.f32.mrb[12].mxu0  ;;  %4174 = vmatprep.mubr.msk.bf16.mxu1 %vm73_vm4, %v5489_v15  ;;  %v5503_v6 = vpack.c.bf16 %v5494_v36, %v5492_v19 }
 0x200   :  { %1829 = vst.msk [vmem:[#allocation3 + $0xe1] sm:$0xff] %vm73_vm4, %v1812_v21  ;;  %v4354_v28 = vadd.f32 %v4166_v2, %v5405_v39  ;;  %v1750_v16 = vpop.f32.mrb[13].mxu0  ;;  %v3778_v2 = vld [vmem:[%s5881_s2 + $0x10] sm:$0xf] }
 0x201   :  { %1827 = vst.msk [vmem:[#allocation3 + $0xc1] sm:$0xff] %vm73_vm4, %v1810_v0  ;;  %v4355_v58 = vadd.f32 %v1750_v16, %v5407_v1  ;;  %v4167_v3 = vpop.f32.mrb[14].mxu0  ;;  %v1851_v0 = vpack.c.bf16 %v5565_v60, %v1835_v42  ;;  %v1837_v16 = vld [vmem:[#allocation3 + $0x20] sm:$0xff]  ;;  %v2518_v8 = vsel %vm1910_vm7, %v3778_v2, 0 }
 0x202   :  { %4175 = vmatmul.mubr.msk.bf16.gmra.mrb[12].mxu1 %vm73_vm4, %v5503_v6  ;;  %v1799_v13 = vadd.f32 %v4354_v28, %v5420_v24  ;;  %v4356_v52 = vadd.f32 %v4167_v3, %v5409_v44  ;;  %v1753_v39 = vpop.f32.mrb[15].mxu0  ;;  %v1838_v3 = vld [vmem:[#allocation3 + $0x30] sm:$0xff]  ;;  %v2135_v28 = vld [vmem:[#allocation3 + $0x2] sm:$0xff] }
 0x203   :  { %v1797_v53 = vadd.f32 %v4355_v58, %v5420_v24  ;;  %v4357_v9 = vadd.f32 %v1753_v39, %v5411_v46  ;;  %v5589_v58 = vld [vmem:[#allocation3 + $0x50] sm:$0xff]  ;;  %v1839_v39 = vld [vmem:[#allocation3 + $0x40] sm:$0xff] }
 0x204   :  { %v1815_v18 = vmax.f32 %v1799_v13, 0.0  ;;  %v1800_v26 = vadd.f32 %v4356_v52, %v5420_v24  ;;  %v5591_v13 = vpack.c.bf16 %v1838_v3, %v1837_v16  ;;  %v2186_v52 = vsel %vm1910_vm7, %v5468_v10, 0 }
 0x205   :  { %v1813_v32 = vmax.f32 %v1797_v53, 0.0  ;;  %v1798_v1 = vadd.f32 %v4357_v9, %v5420_v24  ;;  %v5526_v55 = vld [vmem:[#allocation3 + $0xd1] sm:$0xff]  ;;  %v5596_v53 = vpack.c.bf16 %v5589_v58, %v1839_v39  ;;  %v3769_v9 = vld [vmem:[%s5881_s2 + $0xc] sm:$0xf]  ;;  %v2318_v61 = vpack.c.bf16 %v1839_v39, %v1838_v3 }
 0x206   :  { %1832 = vst.msk [vmem:[#allocation3 + $0x111] sm:$0xff] %vm73_vm4, %v1815_v18  ;;  %v1816_v41 = vmax.f32 %v1800_v26, 0.0  ;;  %v5524_v54 = vld [vmem:[#allocation3 + $0xb1] sm:$0xff]  ;;  %v1841_v18 = vld [vmem:[#allocation3 + $0x60] sm:$0xff]  ;;  %v2352_v62 = vsel %vm1910_vm7, %v3769_v9, 0 }
 0x207   :  { %1830 = vst.msk [vmem:[#allocation3 + $0xf1] sm:$0xff] %vm73_vm4, %v1813_v32  ;;  %v1814_v44 = vmax.f32 %v1798_v1, 0.0  ;;  %v1880_v56 = vpack.c.bf16 %v5524_v54, %v1868_v23  ;;  %v5530_v46 = vld [vmem:[#allocation3 + $0xe1] sm:$0xff]  ;;  %v5532_v20 = vld [vmem:[#allocation3 + $0xd2] sm:$0xff] }
 0x208   :  { %v5534_v30 = vld [vmem:[#allocation3 + $0xe2] sm:$0xff]  ;;  %1833 = vst.msk [vmem:[#allocation3 + $0x121] sm:$0xff] %vm73_vm4, %v1816_v41  ;;  %v5551_v49 = vld [vmem:[#allocation3 + $0xb2] sm:$0xff] }
 0x209   :  { %v5537_v24 = vld [vmem:[#allocation3 + $0xc1] sm:$0xff]  ;;  %1831 = vst.msk [vmem:[#allocation3 + $0x101] sm:$0xff] %vm73_vm4, %v1814_v44  ;;  %4178 = vmatprep.mubr.msk.bf16.mxu1 %vm73_vm4, %v1880_v56  ;;  %v1844_v10 = vld [vmem:[#allocation3 + $0xb0] sm:$0xff] }
 0x20a   :  { %v5539_v5 = vld [vmem:[#allocation3 + $0xc2] sm:$0xff]  ;;  %v5549_v48 = vpack.c.bf16 %v5526_v55, %v5537_v24  ;;  %v1842_v23 = vld [vmem:[#allocation3 + $0x70] sm:$0xff] }
 0x20b   :  { %v1843_v26 = vld [vmem:[#allocation3 + $0xa0] sm:$0xff]  ;;  %v5606_v32 = vpack.c.bf16 %v1842_v23, %v1841_v18  ;;  %v1846_v56 = vld [vmem:[#allocation3 + $0xd0] sm:$0xff] }
 0x20c   :  { %4179 = vmatmul.mubr.msk.bf16.gmra.mrb[16].mxu1 %vm73_vm4, %v5549_v48  ;;  %v1855_v1 = vpack.c.bf16 %v1844_v10, %v1843_v26  ;;  %v1845_v41 = vld [vmem:[#allocation3 + $0xc0] sm:$0xff] }
 0x20d   :  { %v5569_v11 = vld [vmem:[#allocation3 + $0x111] sm:$0xff]  ;;  %v5611_v42 = vpack.c.bf16 %v1846_v56, %v1845_v41 }
 0x20e   :  { %v5559_v51 = vld [vmem:[#allocation3 + $0xf1] sm:$0xff] }
 0x20f   :  { %v5563_v27 = vpack.c.bf16 %v5559_v51, %v5530_v46  ;;  %v5579_v21 = vld [vmem:[#allocation3 + $0xf2] sm:$0xff]  ;;  %v2316_v3 = vld [vmem:[#allocation3 + $0x120] sm:$0xff] }
 0x210   :  { %v5567_v4 = vld [vmem:[#allocation3 + $0x101] sm:$0xff]  ;;  %v1848_v44 = vld [vmem:[#allocation3 + $0xf0] sm:$0xff]  ;;  %v5658_v50 = vpack.c.bf16 %v5579_v21, %v5534_v30 }
 0x211   :  { %v5571_v22 = vld [vmem:[#allocation3 + $0x102] sm:$0xff]  ;;  %4182 = vmatprep.mubr.msk.bf16.mxu1 %vm73_vm4, %v5563_v27  ;;  %v5577_v25 = vpack.c.bf16 %v5569_v11, %v5567_v4  ;;  %v1850_v47 = vld [vmem:[#allocation3 + $0x110] sm:$0xff] }
 0x212   :  { %v1849_v26 = vld [vmem:[#allocation3 + $0x100] sm:$0xff]  ;;  %5891 = vst [vmem:[#allocation5_spill] sm:$0xff] %v5658_v50 }
 0x213   :  { %v5619_v14 = vpack.c.bf16 %v1850_v47, %v1849_v26 }
 0x214   :  { %4183 = vmatmul.mubr.msk.bf16.gmra.mrb[20].mxu1 %vm73_vm4, %v5577_v25 }
 0x215   :  { %4188 = vmatprep.mubr.msk.bf16.mxu1 %vm73_vm4, %v1851_v0  ;;  %v1847_v0 = vld [vmem:[#allocation3 + $0xe0] sm:$0xff] }
 0x21c   :  { %4189 = vmatmul.mubr.msk.bf16.vlgmr.msra.gmra.mrb[8].mxu1 %vm73_vm4, %v5591_v13 }
 0x21d   :  { %4205 = vmatpush3.bf16.msra.mxu1 %v2186_v52  ;;  %4192 = vmatprep.mubr.msk.bf16.mxu1 %vm73_vm4, %v5596_v53  ;;  %v5613_v52 = vpack.c.bf16 %v1848_v44, %v1847_v0 }
 0x21e   :  { %4619 = vmatprep.subr.msk.bf16.mxu1 %vm1910_vm7, %v3769_v9 }
 0x224   :  { %4193 = vmatmul.mubr.msk.bf16.gmra.mrb[12].mxu1 %vm73_vm4, %v5606_v32 }
 0x225   :  { %4196 = vmatprep.mubr.msk.bf16.mxu1 %vm73_vm4, %v1855_v1  ;;  %v2151_v1 = vpack.c.bf16 %v5463_v43, %v2135_v28  ;;  %v2143_v28 = vld [vmem:[#allocation3 + $0xa2] sm:$0xff] }
 0x226   :  { %v2155_v35 = vpack.c.bf16 %v5551_v49, %v2143_v28  ;;  %v2150_v28 = vld [vmem:[#allocation3 + $0x112] sm:$0xff] }
 0x227   :  { %v5665_v31 = vpack.c.bf16 %v2150_v28, %v5571_v22 }
 0x229   :  { %5892 = vst [vmem:[#allocation6_spill] sm:$0xff] %v5665_v31 }
 0x22c   :  { %4197 = vmatmul.mubr.msk.bf16.gmra.mrb[16].mxu1 %vm73_vm4, %v5611_v42 }
 0x22d   :  { %4200 = vmatprep.mubr.msk.bf16.mxu1 %vm73_vm4, %v5613_v52 }
 0x234   :  { %4201 = vmatmul.mubr.msk.bf16.gmra.mrb[20].mxu1 %vm73_vm4, %v5619_v14 }
 0x235   :  { %4206 = vmatprep.mubr.msk.bf16.mxu1 %vm73_vm4, %v2151_v1  ;;  %v5642_v1 = vld [vmem:[#allocation3 + $0x72] sm:$0xff] }
 0x236   :  { %v5646_v9 = vpack.c.bf16 %v5642_v1, %v5496_v33 }
 0x238   :  { %5890 = vst [vmem:[#allocation4_spill] sm:$0xff] %v5646_v9 }
 0x23c   :  { %4207 = vmatmul.mubr.msk.bf16.vlgmr.msra.gmra.mrb[8].mxu1 %vm73_vm4, %v5627_v40 }
 0x23d   :  { %4223 = vmatpush3.bf16.msra.mxu1 %v2352_v62  ;;  %4210 = vmatprep.mubr.msk.bf16.mxu1 %vm73_vm4, %v5632_v45  ;;  %v5654_v62 = vpack.c.bf16 %v5532_v20, %v5539_v5 }
 0x23e   :  { %4620 = vmatprep.subr.msk.bf16.mxu1 %vm1910_vm7, %v3778_v2  ;;  %v2322_v2 = vpack.c.bf16 %v1847_v0, %v1846_v56  ;;  %v5811_v56 = vld [vmem:[%s5882_s4 + $0x2] ss:$0 sm:$0xff] }
 0x244   :  { %4211 = vmatmul.mubr.msk.bf16.gmra.mrb[12].mxu1 %vm73_vm4, %v5646_v9  ;;  %v2319_v9 = vpack.c.bf16 %v1841_v18, %v5589_v58  ;;  %v2323_v58 = vpack.c.bf16 %v1849_v26, %v1848_v44  ;;  %v5894_v18 = vpack.c.bf16 %v5441_v29, %v5437_v38  ;;  %v5897_v38 = vpack.c.bf16 %v5530_v46, %v5526_v55 }
 0x245   :  { %4214 = vmatprep.mubr.msk.bf16.mxu1 %vm73_vm4, %v2155_v35  ;;  %v2317_v35 = vpack.c.bf16 %v1837_v16, %v5565_v60  ;;  %v2308_v60 = vld [vmem:[#allocation3 + $0x80] sm:$0xff]  ;;  %v5898_v29 = vpack.c.bf16 %v5567_v4, %v5559_v51 }
 0x246   :  { %v2320_v16 = vpack.c.bf16 %v2308_v60, %v1842_v23  ;;  %v2640_v51 = vld [vmem:[#allocation3 + $0x82] sm:$0xff] }
 0x247   :  { %v2652_v4 = vpack.c.bf16 %v2640_v51, %v5642_v1 }
 0x24c   :  { %4215 = vmatmul.mubr.msk.bf16.gmra.mrb[16].mxu1 %vm73_vm4, %v5654_v62 }
 0x24d   :  { %4218 = vmatprep.mubr.msk.bf16.mxu1 %vm73_vm4, %v5658_v50  ;;  %v3787_v50 = vld [vmem:[%s5881_s2 + $0x14] sm:$0xf] }
 0x24e   :  { %v2684_v39 = vsel %vm1910_vm7, %v3787_v50, 0 }
 0x254   :  { %4219 = vmatmul.mubr.msk.bf16.gmra.mrb[20].mxu1 %vm73_vm4, %v5665_v31  ;;  %v2321_v31 = vpack.c.bf16 %v1845_v41, %v1844_v10 }
 0x255   :  { %4224 = vmatprep.mubr.msk.bf16.mxu1 %vm73_vm4, %v2317_v35 }
 0x25c   :  { %4225 = vmatmul.mubr.msk.bf16.vlgmr.msra.gmra.mrb[8].mxu1 %vm73_vm4, %v2318_v61  ;;  %v2324_v61 = vpack.c.bf16 %v2316_v3, %v1850_v47  ;;  %v5895_v47 = vpack.c.bf16 %v5492_v19, %v5484_v12  ;;  %v2482_v12 = vld [vmem:[#allocation3 + $0x121] sm:$0xff] }
 0x25d   :  { %4241 = vmatpush3.bf16.msra.mxu1 %v2518_v8  ;;  %4228 = vmatprep.mubr.msk.bf16.mxu1 %vm73_vm4, %v2319_v9  ;;  %v5893_v8 = vpack.c.bf16 %v5448_v59, %v5435_v17  ;;  %v2474_v17 = vld [vmem:[#allocation3 + $0x81] sm:$0xff]  ;;  %v2490_v19 = vpack.c.bf16 %v2482_v12, %v5569_v11  ;;  %v5902_v11 = vpack.c.bf16 %v5539_v5, %v5551_v49 }
 0x25e   :  { %4621 = vmatprep.subr.msk.bf16.mxu1 %vm1910_vm7, %v3787_v50  ;;  %v2486_v59 = vpack.c.bf16 %v2474_v17, %v5494_v36  ;;  %v5896_v50 = vpack.c.bf16 %v5537_v24, %v5524_v54  ;;  %v5899_v36 = vpack.c.bf16 %v5450_v63, %v5463_v43  ;;  %v3416_v54 = vld [vmem:[%s5883_s3] sm:$0xf]  ;;  %v3805_v24 = vld [vmem:[%s5881_s2 + $0x1c] sm:$0xf]  ;;  %v5900_v63 = vpack.c.bf16 %v5445_v57, %v5443_v37 }
 0x25f   :  { %4625 = vmatprep.subr.msk.bf16.mxu0 %vm1910_vm7, %v3416_v54  ;;  %v3447_v55 = vsel %vm1910_vm7, %v3416_v54, 0  ;;  %v5901_v43 = vpack.c.bf16 %v5496_v33, %v5505_v7  ;;  %v5903_v37 = vpack.c.bf16 %v5534_v30, %v5532_v20  ;;  %v5904_v57 = vpack.c.bf16 %v5571_v22, %v5579_v21  ;;  %v2648_v33 = vld [vmem:[#allocation3 + $0x122] sm:$0xff]  ;;  %v2807_v30 = vld [vmem:[#allocation3 + $0x90] sm:$0xff] }
 0x260   :  { %4331 = vmatpush3.bf16.msra.mxu0 %v3447_v55  ;;  %v2656_v7 = vpack.c.bf16 %v2648_v33, %v2150_v28  ;;  %v3017_v5 = vsel %vm1910_vm7, %v3805_v24, 0  ;;  %v3814_v20 = vld [vmem:[%s5881_s2 + $0x20] sm:$0xf]  ;;  %v2819_v49 = vpack.c.bf16 %v2807_v30, %v2308_v60  ;;  %v2815_v22 = vld [vmem:[#allocation3 + $0x130] sm:$0xff] }
 0x261   :  { %v2823_v21 = vpack.c.bf16 %v2815_v22, %v2316_v3  ;;  %v5818_v9 = vld [vmem:[%s5882_s4 + $0x3] ss:$0 sm:$0xff] }
 0x264   :  { %4229 = vmatmul.mubr.msk.bf16.gmra.mrb[12].mxu1 %vm73_vm4, %v2320_v16 }
 0x265   :  { %4232 = vmatprep.mubr.msk.bf16.mxu1 %vm73_vm4, %v2321_v31  ;;  %v3796_v31 = vld [vmem:[%s5881_s2 + $0x18] sm:$0xf] }
 0x266   :  { %v2851_v46 = vsel %vm1910_vm7, %v3796_v31, 0 }
 0x26c   :  { %4233 = vmatmul.mubr.msk.bf16.gmra.mrb[16].mxu1 %vm73_vm4, %v2322_v2 }
 0x26d   :  { %4236 = vmatprep.mubr.msk.bf16.mxu1 %vm73_vm4, %v2323_v58 }
 0x274   :  { %4237 = vmatmul.mubr.msk.bf16.gmra.mrb[20].mxu1 %vm73_vm4, %v2324_v61 }
 0x275   :  { %4242 = vmatprep.mubr.msk.bf16.mxu1 %vm73_vm4, %v5893_v8 }
 0x27c   :  { %4243 = vmatmul.mubr.msk.bf16.vlgmr.msra.gmra.mrb[8].mxu1 %vm73_vm4, %v5894_v18 }
 0x27d   :  { %4259 = vmatpush3.bf16.msra.mxu1 %v2684_v39  ;;  %4246 = vmatprep.mubr.msk.bf16.mxu1 %vm73_vm4, %v5895_v47 }
 0x27e   :  { %4622 = vmatprep.subr.msk.bf16.mxu1 %vm1910_vm7, %v3796_v31 }
 0x284   :  { %4247 = vmatmul.mubr.msk.bf16.gmra.mrb[12].mxu1 %vm73_vm4, %v2486_v59 }
 0x285   :  { %4250 = vmatprep.mubr.msk.bf16.mxu1 %vm73_vm4, %v5896_v50 }
 0x28c   :  { %4251 = vmatmul.mubr.msk.bf16.gmra.mrb[16].mxu1 %vm73_vm4, %v5897_v38 }
 0x28d   :  { %4254 = vmatprep.mubr.msk.bf16.mxu1 %vm73_vm4, %v5898_v29 }
 0x294   :  { %4255 = vmatmul.mubr.msk.bf16.gmra.mrb[20].mxu1 %vm73_vm4, %v2490_v19 }
 0x295   :  { %4260 = vmatprep.mubr.msk.bf16.mxu1 %vm73_vm4, %v5899_v36 }
 0x29c   :  { %4261 = vmatmul.mubr.msk.bf16.vlgmr.msra.gmra.mrb[8].mxu1 %vm73_vm4, %v5900_v63 }
 0x29d   :  { %4277 = vmatpush3.bf16.msra.mxu1 %v2851_v46  ;;  %4264 = vmatprep.mubr.msk.bf16.mxu1 %vm73_vm4, %v5901_v43 }
 0x29e   :  { %4623 = vmatprep.subr.msk.bf16.mxu1 %vm1910_vm7, %v3805_v24 }
 0x2a4   :  { %4265 = vmatmul.mubr.msk.bf16.gmra.mrb[12].mxu1 %vm73_vm4, %v2652_v4 }
 0x2a5   :  { %4268 = vmatprep.mubr.msk.bf16.mxu1 %vm73_vm4, %v5902_v11 }
 0x2ac   :  { %4269 = vmatmul.mubr.msk.bf16.gmra.mrb[16].mxu1 %vm73_vm4, %v5903_v37 }
 0x2ad   :  { %4272 = vmatprep.mubr.msk.bf16.mxu1 %vm73_vm4, %v5904_v57 }
 0x2b4   :  { %4273 = vmatmul.mubr.msk.bf16.gmra.mrb[20].mxu1 %vm73_vm4, %v2656_v7 }
 0x2b5   :  { %4278 = vmatprep.mubr.msk.bf16.mxu1 %vm73_vm4, %v5591_v13  ;;  %v3183_v13 = vsel %vm1910_vm7, %v3814_v20, 0 }
 0x2bc   :  { %4279 = vmatmul.mubr.msk.bf16.vlgmr.msra.gmra.mrb[8].mxu1 %vm73_vm4, %v5596_v53  ;;  %v2973_v53 = vld [vmem:[#allocation3 + $0x91] sm:$0xff] }
 0x2bd   :  { %4295 = vmatpush3.bf16.msra.mxu1 %v3017_v5  ;;  %4282 = vmatprep.mubr.msk.bf16.mxu1 %vm73_vm4, %v5606_v32  ;;  %v2985_v10 = vpack.c.bf16 %v2973_v53, %v2474_v17 }
 0x2be   :  { %4624 = vmatprep.subr.msk.bf16.mxu1 %vm1910_vm7, %v3814_v20 }
 0x2c4   :  { %4283 = vmatmul.mubr.msk.bf16.gmra.mrb[12].mxu1 %vm73_vm4, %v2819_v49 }
 0x2c5   :  { %4286 = vmatprep.mubr.msk.bf16.mxu1 %vm73_vm4, %v5611_v42 }
 0x2cc   :  { %4287 = vmatmul.mubr.msk.bf16.gmra.mrb[16].mxu1 %vm73_vm4, %v5613_v52 }
 0x2cd   :  { %4290 = vmatprep.mubr.msk.bf16.mxu1 %vm73_vm4, %v5619_v14 }
 0x2d4   :  { %4291 = vmatmul.mubr.msk.bf16.gmra.mrb[20].mxu1 %vm73_vm4, %v2823_v21 }
 0x2d5   :  { %4296 = vmatprep.mubr.msk.bf16.mxu1 %vm73_vm4, %v5460_v34  ;;  %v2981_v34 = vld [vmem:[#allocation3 + $0x131] sm:$0xff] }
 0x2d6   :  { %v2989_v14 = vpack.c.bf16 %v2981_v34, %v2482_v12 }
 0x2dc   :  { %4297 = vmatmul.mubr.msk.bf16.vlgmr.msra.gmra.mrb[8].mxu1 %vm73_vm4, %v5489_v15  ;;  %v5905_v15 = vld [vmem:[#allocation4_spill] sm:$0xff] }
 0x2dd   :  { %4313 = vmatpush3.bf16.msra.mxu1 %v3183_v13  ;;  %4300 = vmatprep.mubr.msk.bf16.mxu1 %vm73_vm4, %v5503_v6  ;;  %v3139_v6 = vld [vmem:[#allocation3 + $0x92] sm:$0xff] }
 0x2e4   :  { %4301 = vmatmul.mubr.msk.bf16.gmra.mrb[12].mxu1 %vm73_vm4, %v2985_v10 }
 0x2e5   :  { %4304 = vmatprep.mubr.msk.bf16.mxu1 %vm73_vm4, %v5549_v48  ;;  %v3151_v48 = vpack.c.bf16 %v3139_v6, %v2640_v51 }
 0x2ec   :  { %4305 = vmatmul.mubr.msk.bf16.gmra.mrb[16].mxu1 %vm73_vm4, %v5563_v27  ;;  %v5906_v27 = vld [vmem:[#allocation5_spill] sm:$0xff] }
 0x2ed   :  { %4308 = vmatprep.mubr.msk.bf16.mxu1 %vm73_vm4, %v5577_v25  ;;  %v5907_v25 = vld [vmem:[#allocation6_spill] sm:$0xff] }
 0x2f4   :  { %4309 = vmatmul.mubr.msk.bf16.gmra.mrb[20].mxu1 %vm73_vm4, %v2989_v14 }
 0x2f5   :  { %4314 = vmatprep.mubr.msk.bf16.mxu1 %vm73_vm4, %v5627_v40  ;;  %v3147_v40 = vld [vmem:[#allocation3 + $0x132] sm:$0xff] }
 0x2f6   :  { %v3155_v23 = vpack.c.bf16 %v3147_v40, %v2648_v33 }
 0x2fc   :  { %4315 = vmatmul.mubr.msk.bf16.vlgmr.msra.gmra.mrb[8].mxu1 %vm73_vm4, %v5632_v45  ;;  %v5805_v45 = vld [vmem:[%s5882_s4 + $0x1] ss:$0 sm:$0xff] }
 0x2fd   :  { %4318 = vmatprep.mubr.msk.bf16.mxu1 %vm73_vm4, %v5905_v15 }
 0x304   :  { %4319 = vmatmul.mubr.msk.bf16.gmra.mrb[12].mxu1 %vm73_vm4, %v3151_v48 }
 0x305   :  { %4322 = vmatprep.mubr.msk.bf16.mxu1 %vm73_vm4, %v5654_v62 }
 0x30c   :  { %4323 = vmatmul.mubr.msk.bf16.gmra.mrb[16].mxu1 %vm73_vm4, %v5906_v27 }
 0x30d   :  { %4326 = vmatprep.mubr.msk.bf16.mxu1 %vm73_vm4, %v5907_v25 }
 0x314   :  { %4327 = vmatmul.mubr.msk.bf16.gmra.mrb[20].mxu1 %vm73_vm4, %v3155_v23 }
 0x3cf   :  { %v4316_v32 = vpop.f32.mrb[8].mxu1 }
 0x3d0   :  { %v3304_v41 = vadd.f32 %v4316_v32, %v5805_v45  ;;  %v3219_v44 = vpop.f32.mrb[9].mxu1 }
 0x3d1   :  { %v3302_v42 = vadd.f32 %v5805_v45, %v3219_v44  ;;  %v4317_v0 = vpop.f32.mrb[10].mxu1 }
 0x3d2   :  { %v3320_v52 = vmax.f32 %v3304_v41, 0.0  ;;  %v3305_v26 = vadd.f32 %v4317_v0, %v5805_v45  ;;  %v3222_v1 = vpop.f32.mrb[11].mxu1 }
 0x3d3   :  { %v3318_v62 = vmax.f32 %v3302_v42, 0.0  ;;  %v3303_v28 = vadd.f32 %v5805_v45, %v3222_v1 }
 0x3d4   :  { %v3341_v35 = vmul.f32 %v5811_v56, %v3320_v52  ;;  %v3321_v60 = vmax.f32 %v3305_v26, 0.0 }
 0x3d5   :  { %v3339_v16 = vmul.f32 %v5811_v56, %v3318_v62  ;;  %v3319_v2 = vmax.f32 %v3303_v28, 0.0 }
 0x3d6   :  { %v3362_v58 = vadd.f32 %v5818_v9, %v3341_v35  ;;  %v3342_v3 = vmul.f32 %v5811_v56, %v3321_v60 }
 0x3d7   :  { %v3360_v61 = vadd.f32 %v5818_v9, %v3339_v16  ;;  %v3340_v8 = vmul.f32 %v5811_v56, %v3319_v2  ;;  %v4320_v39 = vpop.f32.mrb[12].mxu1 }
 0x3d8   :  { %v3378_v31 = vmax.f32 %v3362_v58, 0.0  ;;  %v3363_v18 = vadd.f32 %v5818_v9, %v3342_v3  ;;  %v3308_v47 = vadd.f32 %v4320_v39, %v5805_v45  ;;  %v3235_v17 = vpop.f32.mrb[13].mxu1 }
 0x3d9   :  { %v3376_v59 = vmax.f32 %v3360_v61, 0.0  ;;  %v3361_v50 = vadd.f32 %v5818_v9, %v3340_v8  ;;  %v3306_v38 = vadd.f32 %v5805_v45, %v3235_v17  ;;  %v4321_v29 = vpop.f32.mrb[14].mxu1 }
 0x3da   :  { %v3379_v12 = vmax.f32 %v3363_v18, 0.0  ;;  %v3324_v19 = vmax.f32 %v3308_v47, 0.0  ;;  %v3309_v36 = vadd.f32 %v4321_v29, %v5805_v45  ;;  %v3238_v54 = vpop.f32.mrb[15].mxu1  ;;  %v3394_v63 = vmin.f32 %v3378_v31, 6.0 }
 0x3db   :  { %v3377_v55 = vmax.f32 %v3361_v50, 0.0  ;;  %v3322_v46 = vmax.f32 %v3306_v38, 0.0  ;;  %v3307_v24 = vadd.f32 %v5805_v45, %v3238_v54  ;;  %v3392_v11 = vmin.f32 %v3376_v59, 6.0 }
 0x3dc   :  { %v3395_v43 = vmin.f32 %v3379_v12, 6.0  ;;  %v3345_v51 = vmul.f32 %v5811_v56, %v3324_v19  ;;  %v3325_v4 = vmax.f32 %v3309_v36, 0.0 }
 0x3dd   :  { %v3393_v37 = vmin.f32 %v3377_v55, 6.0  ;;  %v3343_v57 = vmul.f32 %v5811_v56, %v3322_v46  ;;  %v3323_v33 = vmax.f32 %v3307_v24, 0.0 }
 0x3de   :  { %v3409_v7 = vpack.c.bf16 %v3395_v43, %v3394_v63  ;;  %v3366_v5 = vadd.f32 %v5818_v9, %v3345_v51  ;;  %v3346_v20 = vmul.f32 %v5811_v56, %v3325_v4 }
 0x3df   :  { %v3364_v30 = vadd.f32 %v5818_v9, %v3343_v57  ;;  %v3344_v49 = vmul.f32 %v5811_v56, %v3323_v33  ;;  %v4324_v22 = vpop.f32.mrb[16].mxu1  ;;  %v3408_v21 = vpack.c.bf16 %v3393_v37, %v3392_v11 }
 0x3e0   :  { %v3382_v13 = vmax.f32 %v3366_v5, 0.0  ;;  %v3367_v53 = vadd.f32 %v5818_v9, %v3346_v20  ;;  %v3312_v10 = vadd.f32 %v4324_v22, %v5805_v45  ;;  %v3251_v34 = vpop.f32.mrb[17].mxu1 }
 0x3e1   :  { %v3380_v14 = vmax.f32 %v3364_v30, 0.0  ;;  %v3365_v15 = vadd.f32 %v5818_v9, %v3344_v49  ;;  %v3310_v6 = vadd.f32 %v5805_v45, %v3251_v34  ;;  %v4325_v48 = vpop.f32.mrb[18].mxu1  ;;  %4332 = vmatprep.mubr.msk.bf16.mxu0 %vm73_vm4, %v3408_v21 }
 0x3e2   :  { %v3383_v27 = vmax.f32 %v3367_v53, 0.0  ;;  %v3328_v25 = vmax.f32 %v3312_v10, 0.0  ;;  %v3313_v40 = vadd.f32 %v4325_v48, %v5805_v45  ;;  %v3254_v23 = vpop.f32.mrb[19].mxu1  ;;  %4333 = vmatmul.mubr.msk.bf16.vlgmr.msra.gmra.mrb[16].mxu0 %vm73_vm4, %v3409_v7  ;;  %v3398_v42 = vmin.f32 %v3382_v13, 6.0 }
 0x3e3   :  { %v3381_v32 = vmax.f32 %v3365_v15, 0.0  ;;  %v3326_v41 = vmax.f32 %v3310_v6, 0.0  ;;  %v3311_v44 = vadd.f32 %v5805_v45, %v3254_v23  ;;  %v3396_v1 = vmin.f32 %v3380_v14, 6.0 }
 0x3e4   :  { %v3399_v0 = vmin.f32 %v3383_v27, 6.0  ;;  %v3349_v52 = vmul.f32 %v5811_v56, %v3328_v25  ;;  %v3329_v26 = vmax.f32 %v3313_v40, 0.0 }
 0x3e5   :  { %v3397_v62 = vmin.f32 %v3381_v32, 6.0  ;;  %v3347_v28 = vmul.f32 %v5811_v56, %v3326_v41  ;;  %v3327_v35 = vmax.f32 %v3311_v44, 0.0 }
 0x3e6   :  { %v3370_v60 = vadd.f32 %v5818_v9, %v3349_v52  ;;  %v3350_v16 = vmul.f32 %v5811_v56, %v3329_v26  ;;  %v3411_v2 = vpack.c.bf16 %v3399_v0, %v3398_v42 }
 0x3e7   :  { %v3368_v58 = vadd.f32 %v5818_v9, %v3347_v28  ;;  %v3348_v3 = vmul.f32 %v5811_v56, %v3327_v35  ;;  %v4328_v61 = vpop.f32.mrb[20].mxu1  ;;  %v3410_v8 = vpack.c.bf16 %v3397_v62, %v3396_v1 }
 0x3e8   :  { %v3386_v39 = vmax.f32 %v3370_v60, 0.0  ;;  %v3371_v31 = vadd.f32 %v5818_v9, %v3350_v16  ;;  %v3316_v18 = vadd.f32 %v4328_v61, %v5805_v45  ;;  %v3267_v47 = vpop.f32.mrb[21].mxu1 }
 0x3e9   :  { %v3384_v17 = vmax.f32 %v3368_v58, 0.0  ;;  %v3369_v59 = vadd.f32 %v5818_v9, %v3348_v3  ;;  %v3314_v50 = vadd.f32 %v5805_v45, %v3267_v47  ;;  %v4329_v38 = vpop.f32.mrb[22].mxu1  ;;  %4336 = vmatprep.mubr.msk.bf16.mxu0 %vm73_vm4, %v3410_v8 }
 0x3ea   :  { %v3387_v29 = vmax.f32 %v3371_v31, 0.0  ;;  %v3332_v12 = vmax.f32 %v3316_v18, 0.0  ;;  %v3317_v19 = vadd.f32 %v4329_v38, %v5805_v45  ;;  %v3270_v36 = vpop.f32.mrb[23].mxu1  ;;  %4337 = vmatmul.mubr.msk.bf16.gmra.mrb[20].mxu0 %vm73_vm4, %v3411_v2  ;;  %v3402_v24 = vmin.f32 %v3386_v39, 6.0 }
 0x3eb   :  { %v3385_v54 = vmax.f32 %v3369_v59, 0.0  ;;  %v3330_v55 = vmax.f32 %v3314_v50, 0.0  ;;  %v3315_v46 = vadd.f32 %v5805_v45, %v3270_v36  ;;  %v3400_v4 = vmin.f32 %v3384_v17, 6.0 }
 0x3ec   :  { %v3403_v63 = vmin.f32 %v3387_v29, 6.0  ;;  %v3353_v43 = vmul.f32 %v5811_v56, %v3332_v12  ;;  %v3333_v51 = vmax.f32 %v3317_v19, 0.0 }
 0x3ed   :  { %v3401_v11 = vmin.f32 %v3385_v54, 6.0  ;;  %v3351_v37 = vmul.f32 %v5811_v56, %v3330_v55  ;;  %v3331_v57 = vmax.f32 %v3315_v46, 0.0 }
 0x3ee   :  { %v3374_v33 = vadd.f32 %v5818_v9, %v3353_v43  ;;  %v3354_v7 = vmul.f32 %v5811_v56, %v3333_v51  ;;  %v3413_v5 = vpack.c.bf16 %v3403_v63, %v3402_v24 }
 0x3ef   :  { %v3372_v20 = vadd.f32 %v5818_v9, %v3351_v37  ;;  %v3352_v30 = vmul.f32 %v5811_v56, %v3331_v57  ;;  %v3412_v45 = vpack.c.bf16 %v3401_v11, %v3400_v4  ;;  %v3826_v56 = vld [vmem:[%s5882_s4 + $0x4] ss:$0 sm:$0xff] }
 0x3f0   :  { %v3390_v49 = vmax.f32 %v3374_v33, 0.0  ;;  %v3375_v22 = vadd.f32 %v5818_v9, %v3354_v7 }
 0x3f1   :  { %v3388_v21 = vmax.f32 %v3372_v20, 0.0  ;;  %v3373_v13 = vadd.f32 %v5818_v9, %v3352_v30  ;;  %4340 = vmatprep.mubr.msk.bf16.mxu0 %vm73_vm4, %v3412_v45 }
 0x3f2   :  { %v3391_v53 = vmax.f32 %v3375_v22, 0.0  ;;  %4341 = vmatmul.mubr.msk.bf16.gmra.mrb[24].mxu0 %vm73_vm4, %v3413_v5  ;;  %v3406_v34 = vmin.f32 %v3390_v49, 6.0 }
 0x3f3   :  { %v3389_v10 = vmax.f32 %v3373_v13, 0.0  ;;  %v3404_v15 = vmin.f32 %v3388_v21, 6.0 }
 0x3f4   :  { %v3407_v14 = vmin.f32 %v3391_v53, 6.0 }
 0x3f5   :  { %v3405_v6 = vmin.f32 %v3389_v10, 6.0 }
 0x3f6   :  { %v3415_v48 = vpack.c.bf16 %v3407_v14, %v3406_v34 }
 0x3f7   :  { %v3414_v27 = vpack.c.bf16 %v3405_v6, %v3404_v15 }
 0x3f9   :  { %4344 = vmatprep.mubr.msk.bf16.mxu0 %vm73_vm4, %v3414_v27 }
 0x3fa   :  { %4345 = vmatmul.mubr.msk.bf16.gmra.mrb[28].mxu0 %vm73_vm4, %v3415_v48 }
 0x4b5   :  { %v4334_v9 = vpop.f32.mrb[16].mxu0 }
 0x4b6   :  { %v3483_v25 = vpop.f32.mrb[17].mxu0  ;;  %v3492_v42 = vadd.f32 %v4334_v9, %v3826_v56 }
 0x4b7   :  { %v4335_v40 = vpop.f32.mrb[18].mxu0  ;;  %v3484_v23 = vadd.f32 %v3826_v56, %v3483_v25 }
 0x4b8   :  { %v3486_v32 = vpop.f32.mrb[19].mxu0  ;;  %v3548_v28 = vmax.f32 %v3492_v42, 0.0  ;;  %v3495_v35 = vadd.f32 %v4335_v40, %v3826_v56 }
 0x4b9   :  { %v3487_v41 = vadd.f32 %v3826_v56, %v3486_v32  ;;  %v3546_v44 = vmax.f32 %v3484_v23, 0.0 }
 0x4ba   :  { %v3549_v60 = vmax.f32 %v3495_v35, 0.0 }
 0x4bb   :  { %3562 = vxpose.xlu0.b32.start [1/16] (narrow) %v3546_v44, 8  ;;  %v3547_v0 = vmax.f32 %v3487_v41, 0.0 }
 0x4bd   :  { %v4338_v52 = vpop.f32.mrb[20].mxu0 }
 0x4be   :  { %v3499_v26 = vpop.f32.mrb[21].mxu0  ;;  %v3508_v31 = vadd.f32 %v4338_v52, %v3826_v56 }
 0x4bf   :  { %v4339_v1 = vpop.f32.mrb[22].mxu0  ;;  %3563 = vxpose.xlu0.b32.cont [2/16] (narrow) %v3547_v0, 8  ;;  %v3500_v16 = vadd.f32 %v3826_v56, %v3499_v26 }
 0x4c0   :  { %v3502_v62 = vpop.f32.mrb[23].mxu0  ;;  %v3552_v38 = vmax.f32 %v3508_v31, 0.0  ;;  %v3511_v29 = vadd.f32 %v4339_v1, %v3826_v56 }
 0x4c1   :  { %v3550_v8 = vmax.f32 %v3500_v16, 0.0  ;;  %v3503_v39 = vadd.f32 %v3826_v56, %v3502_v62 }
 0x4c2   :  { %v3553_v12 = vmax.f32 %v3511_v29, 0.0 }
 0x4c3   :  { %3564 = vxpose.xlu0.b32.cont [3/16] (narrow) %v3548_v28, 8  ;;  %v3551_v18 = vmax.f32 %v3503_v39, 0.0 }
 0x4c5   :  { %v4342_v2 = vpop.f32.mrb[24].mxu0 }
 0x4c6   :  { %v3515_v58 = vpop.f32.mrb[25].mxu0  ;;  %v3524_v55 = vadd.f32 %v4342_v2, %v3826_v56 }
 0x4c7   :  { %v4343_v3 = vpop.f32.mrb[26].mxu0  ;;  %3565 = vxpose.xlu0.b32.cont [4/16] (narrow) %v3549_v60, 8  ;;  %v3516_v19 = vadd.f32 %v3826_v56, %v3515_v58 }
 0x4c8   :  { %v3518_v61 = vpop.f32.mrb[27].mxu0  ;;  %v3556_v24 = vmax.f32 %v3524_v55, 0.0  ;;  %v3527_v63 = vadd.f32 %v4343_v3, %v3826_v56 }
 0x4c9   :  { %v3554_v36 = vmax.f32 %v3516_v19, 0.0  ;;  %v3519_v54 = vadd.f32 %v3826_v56, %v3518_v61 }
 0x4ca   :  { %v3557_v43 = vmax.f32 %v3527_v63, 0.0 }
 0x4cb   :  { %3566 = vxpose.xlu0.b32.cont [5/16] (narrow) %v3550_v8, 8  ;;  %v3555_v46 = vmax.f32 %v3519_v54, 0.0 }
 0x4cd   :  { %v4346_v47 = vpop.f32.mrb[28].mxu0 }
 0x4ce   :  { %v3531_v17 = vpop.f32.mrb[29].mxu0  ;;  %v3540_v37 = vadd.f32 %v4346_v47, %v3826_v56 }
 0x4cf   :  { %v4347_v59 = vpop.f32.mrb[30].mxu0  ;;  %3567 = vxpose.xlu0.b32.cont [6/16] (narrow) %v3551_v18, 8  ;;  %v3532_v51 = vadd.f32 %v3826_v56, %v3531_v17 }
 0x4d0   :  { %v3534_v50 = vpop.f32.mrb[31].mxu0  ;;  %v3560_v33 = vmax.f32 %v3540_v37, 0.0  ;;  %v3543_v7 = vadd.f32 %v4347_v59, %v3826_v56 }
 0x4d1   :  { %v3558_v4 = vmax.f32 %v3532_v51, 0.0  ;;  %v3535_v11 = vadd.f32 %v3826_v56, %v3534_v50 }
 0x4d2   :  { %v3561_v5 = vmax.f32 %v3543_v7, 0.0 }
 0x4d3   :  { %3568 = vxpose.xlu0.b32.cont [7/16] (narrow) %v3552_v38, 8  ;;  %v3559_v57 = vmax.f32 %v3535_v11, 0.0 }
 0x4d7   :  { %3569 = vxpose.xlu0.b32.cont [8/16] (narrow) %v3553_v12, 8 }
 0x4db   :  { %3570 = vxpose.xlu0.b32.cont [9/16] (narrow) %v3554_v36, 8 }
 0x4df   :  { %3571 = vxpose.xlu0.b32.cont [10/16] (narrow) %v3555_v46, 8 }
 0x4e3   :  { %3572 = vxpose.xlu0.b32.cont [11/16] (narrow) %v3556_v24, 8 }
 0x4e7   :  { %3573 = vxpose.xlu0.b32.cont [12/16] (narrow) %v3557_v43, 8 }
 0x4eb   :  { %3574 = vxpose.xlu0.b32.cont [13/16] (narrow) %v3558_v4, 8 }
 0x4ef   :  { %3575 = vxpose.xlu0.b32.cont [14/16] (narrow) %v3559_v57, 8 }
 0x4f3   :  { %3576 = vxpose.xlu0.b32.cont [15/16] (narrow) %v3560_v33, 8 }
 0x4f7   :  { %3577 = vxpose.xlu0.b32.end [16/16] (narrow) %v3561_v5, 8 }
 0x53b   :  { %v3578_v20 = vpop.trf.xlu0 }
 0x53c   :  { %3594 = vst [vmem:[%s5884_s5] sm:$0xff] %v3578_v20 }

</bundles_post_ra>
